<compile_context>
chip_gen: v7x
topology: tpu7x:2x2x1
jax: 0.10.0
libtpu: 0.0.40
codegen_flags: <defaults>
</compile_context>

<pallas_src>
import math
import numpy as np
import jax
import jax.numpy as jnp
from jax.experimental import pallas as pl
from jax.experimental.pallas import tpu as pltpu  # noqa: F401  (TPU backend)

# ---- hyperparameters (the `p` object of the PyTorch module) -----------------
D_X = 32            # d_x == d_h (model width)
N_I = 2             # number of heads
D_HEAD = 16         # d_q = d_k = d_v = d_r
D_K = D_HEAD
SEQ = 8
BATCH = 2
NUM_KNOTS = 5
SPLINE_ORDER = 3
LN_EPS = 1e-5
NEG_INF = -1e10     # matches masked_fill(-10000000000.0)
LANES = 128

# B-spline knots: torch.linspace(-1, 1, num_knots + spline_order)
KNOTS = np.linspace(-1.0, 1.0, NUM_KNOTS + SPLINE_ORDER)

# ---- packed parameter slab layout (rows of a (R_TOTAL, 128) f32 array) ------
R_W_SA_QKVR = 0                      # (32, 128)  self-attn fused Q|K|V|R (per-head)
R_W_CA_QR   = R_W_SA_QKVR + D_X      # (32,  64)  cross-attn fused Q|R   (per-head)
R_W_CA_KV   = R_W_CA_QR + D_X        # (32,  64)  cross-attn fused K|V   (per-head)
R_W_SA_O    = R_W_CA_KV + D_X        # (32,  32)  self-attn W_o^T (head h = rows h*16..)
R_W_CA_O    = R_W_SA_O + D_X         # (32,  32)  cross-attn W_o^T
R_W_KAN_OUT = R_W_CA_O + D_X         # (32,  32)  KAN outer_coeffs^T
R_VEC       = R_W_KAN_OUT + D_X      # vector rows start here
V_B_SA_QKVR = 0                      # (128,)
V_B_CA_QR   = 1                      # (64,)
V_B_CA_KV   = 2                      # (64,)
V_B_SA_O    = 3                      # (32,)
V_B_CA_O    = 4                      # (32,)
V_LN1W, V_LN1B = 5, 6
V_LN2W, V_LN2B = 7, 8
V_LN3W, V_LN3B = 9, 10
V_LN4W, V_LN4B = 11, 12
V_KAN_IN0 = 13                       # inner_coeffs[:, k], k = 0, 1
N_VEC_ROWS = V_KAN_IN0 + (NUM_KNOTS - SPLINE_ORDER)
R_TOTAL = R_VEC + ((N_VEC_ROWS + 7) // 8) * 8            # 208 rows


# ---------------- host-side B-spline -> piecewise cubic collapse -------------
def _bspline_basis_np(x, knot_idx, order):
    """numpy mirror of KANLayer.bspline_basis (Cox-de Boor recursion)."""
    if order == 0:
        if knot_idx + 1 >= len(KNOTS):
            return np.zeros_like(x)
        return ((KNOTS[knot_idx] <= x) & (x < KNOTS[knot_idx + 1])).astype(np.float64)
    left = 0.0
    right = 0.0
    if knot_idx + order < len(KNOTS) and KNOTS[knot_idx + order] != KNOTS[knot_idx]:
        left = ((x - KNOTS[knot_idx])
                / (KNOTS[knot_idx + order] - KNOTS[knot_idx])
                * _bspline_basis_np(x, knot_idx, order - 1))
    if (knot_idx + order + 1 < len(KNOTS)
            and KNOTS[knot_idx + order + 1] != KNOTS[knot_idx + 1]):
        right = ((KNOTS[knot_idx + order + 1] - x)
                 / (KNOTS[knot_idx + order + 1] - KNOTS[knot_idx + 1])
                 * _bspline_basis_np(x, knot_idx + 1, order - 1))
    return left + right


def _piecewise_cubic_coeffs():
    """For each used basis k and each knot interval j in its support, the exact
    cubic (c3,c2,c1,c0) with B_k(x) = ((c3*x + c2)*x + c1)*x + c0 on
    [KNOTS[j], KNOTS[j+1])."""
    pieces = []
    for k in range(NUM_KNOTS - SPLINE_ORDER):
        per_k = []
        for j in range(k, k + SPLINE_ORDER + 1):
            a, b = KNOTS[j], KNOTS[j + 1]
            xs = a + (b - a) * np.array([0.15, 0.4, 0.65, 0.9])
            ys = _bspline_basis_np(xs, k, SPLINE_ORDER)
            c3, c2, c1, c0 = np.linalg.solve(np.vander(xs, 4), ys)
            per_k.append((j, (float(c3), float(c2), float(c1), float(c0))))
        pieces.append(per_k)
    return pieces


_KAN_PIECES = _piecewise_cubic_coeffs()
_KAN_INTERVALS = sorted({j for per_k in _KAN_PIECES for j, _ in per_k})

# sanity-check the collapse against the reference recursion (host, float64)
_xchk = np.linspace(-0.999, 0.999, 4001)
for _k, _per_k in enumerate(_KAN_PIECES):
    _ref = _bspline_basis_np(_xchk, _k, SPLINE_ORDER)
    _fit = np.zeros_like(_xchk)
    for _j, (_c3, _c2, _c1, _c0) in _per_k:
        _m = (KNOTS[_j] <= _xchk) & (_xchk < KNOTS[_j + 1])
        _fit += _m * (((_c3 * _xchk + _c2) * _xchk + _c1) * _xchk + _c0)
    assert np.max(np.abs(_ref - _fit)) < 1e-7


# ------------------------------- the kernel ----------------------------------
def decoder_layer_kernel(acts_ref, bias_ref, par_ref, out_ref):
    BS = BATCH * SEQ                                # 16 rows per activation slab

    def vrow(r, width=D_X):                         # (1, width) vector row
        return par_ref[R_VEC + r:R_VEC + r + 1, 0:width]

    def wblock(r0, rows=D_X, width=D_X):            # (rows, width) weight block
        return par_ref[r0:r0 + rows, 0:width]

    def layernorm(x, rw, rb):
        mu = jnp.mean(x, axis=-1, keepdims=True)
        var = jnp.mean((x - mu) ** 2, axis=-1, keepdims=True)
        return (x - mu) * jax.lax.rsqrt(var + LN_EPS) * vrow(rw) + vrow(rb)

    def attend_head(q, k, v, r, bias, wo):
        # q/k/v/r: (BS, 16); bias: (BS, BS) block-diag additive mask; wo: (16, 32)
        # scale 1/sqrt(d_k) is already folded into q's weights/bias.
        s = jax.lax.dot_general(q, k, (((1,), (1,)), ((), ())),
                                preferred_element_type=jnp.float32) + bias
        s = s - jnp.max(s, axis=-1, keepdims=True)          # stable softmax
        e = jnp.exp(s)
        p = e * pl.reciprocal(jnp.sum(e, axis=-1, keepdims=True), approx=True)
        ctx = jnp.dot(p, v, preferred_element_type=jnp.float32)
        return jnp.dot(ctx * r, wo, preferred_element_type=jnp.float32)

    def self_attention(z, bias):
        # one fused projection: (BS,32) @ (32,128), lanes = [h0: q|k|v|r, h1: ...]
        fused = (jnp.dot(z, wblock(R_W_SA_QKVR, D_X, 4 * D_HEAD * N_I),
                         preferred_element_type=jnp.float32)
                 + vrow(V_B_SA_QKVR, 4 * D_HEAD * N_I))
        o = vrow(V_B_SA_O)                                   # (1, 32) output bias
        for h in range(N_I):                                 # static head loop
            b = h * 4 * D_HEAD
            o = o + attend_head(fused[:, b + 0 * D_HEAD:b + 1 * D_HEAD],
                                fused[:, b + 1 * D_HEAD:b + 2 * D_HEAD],
                                fused[:, b + 2 * D_HEAD:b + 3 * D_HEAD],
                                fused[:, b + 3 * D_HEAD:b + 4 * D_HEAD],
                                bias,
                                wblock(R_W_SA_O + h * D_HEAD, D_HEAD, D_X))
        return o

    def cross_attention(z, src, bias):
        qr = (jnp.dot(z, wblock(R_W_CA_QR, D_X, 2 * D_HEAD * N_I),
                      preferred_element_type=jnp.float32)
              + vrow(V_B_CA_QR, 2 * D_HEAD * N_I))
        kv = (jnp.dot(src, wblock(R_W_CA_KV, D_X, 2 * D_HEAD * N_I),
                      preferred_element_type=jnp.float32)
              + vrow(V_B_CA_KV, 2 * D_HEAD * N_I))
        o = vrow(V_B_CA_O)
        for h in range(N_I):
            b = h * 2 * D_HEAD
            o = o + attend_head(qr[:, b:b + D_HEAD],
                                kv[:, b:b + D_HEAD],
                                kv[:, b + D_HEAD:b + 2 * D_HEAD],
                                qr[:, b + D_HEAD:b + 2 * D_HEAD],
                                bias,
                                wblock(R_W_CA_O + h * D_HEAD, D_HEAD, D_X))
        return o

    def kan_filter(x):
        t = jnp.tanh(x)                                      # (BS, 32)
        masks = {j: ((float(KNOTS[j]) <= t) & (t < float(KNOTS[j + 1])))
                     .astype(jnp.float32)
                 for j in _KAN_INTERVALS}
        inner = jnp.zeros_like(t)
        for kk, per_k in enumerate(_KAN_PIECES):             # only k in {0, 1} used
            basis = jnp.zeros_like(t)
            for j, (c3, c2, c1, c0) in per_k:
                poly = ((c3 * t + c2) * t + c1) * t + c0     # Horner
                basis = basis + masks[j] * poly
            inner = inner + basis * vrow(V_KAN_IN0 + kk)
        return jnp.dot(inner, wblock(R_W_KAN_OUT),
                       preferred_element_type=jnp.float32)

    trg = acts_ref[0:BS, :]                                  # (16, 32)
    src = acts_ref[BS:2 * BS, :]                             # (16, 32)
    self_bias = bias_ref[0:BS, :]                            # (16, 16)
    cross_bias = bias_ref[BS:2 * BS, :]                      # (16, 16)

    # -- sublayer 1: LN -> masked self-attention -> (dropout1 = id) -> residual
    z = layernorm(trg, V_LN1W, V_LN1B)
    trg = trg + self_attention(z, self_bias)

    # -- sublayer 2: LN -> cross-attention over encoder output -> residual
    z = layernorm(trg, V_LN2W, V_LN2B)
    trg = trg + cross_attention(z, src, cross_bias)

    # -- sublayer 3: LN -> KAN dense filter -> (dropout3 = id) -> residual
    z = layernorm(trg, V_LN3W, V_LN3B)
    trg = trg + kan_filter(z)

    out_ref[...] = layernorm(trg, V_LN4W, V_LN4B).astype(out_ref.dtype)


# ------------------------------- wrapper --------------------------------------
@jax.jit
def decoder_layer_pallas(trg, src, trg_mask, src_mask, params_slab):
    """trg/src: (B, S, D); trg_mask: (B,1,S,S); src_mask: (B,1,1,S);
    params_slab: packed (R_TOTAL, 128) f32 slab (see prepare_params)."""
    B, S, D = trg.shape
    # activation slab: rows [0:BS] = trg, [BS:2BS] = src
    acts = jnp.concatenate([trg.reshape(B * S, D), src.reshape(B * S, D)],
                           axis=0).astype(jnp.float32)
    # block-diagonal additive biases (cross-batch blocks get -1e10 too)
    tmask = trg_mask.reshape(B, S, S).astype(jnp.float32)
    smask = src_mask.reshape(B, 1, S).astype(jnp.float32)
    eye = jnp.eye(B, dtype=jnp.float32)[:, None, :, None]            # (B,1,B,1)
    self_allowed = (eye * tmask[:, :, None, :]).reshape(B * S, B * S)
    cross_allowed = jnp.broadcast_to(eye * smask[:, :, None, :],
                                     (B, S, B, S)).reshape(B * S, B * S)
    self_bias = jnp.where(self_allowed > 0.5, 0.0, NEG_INF).astype(jnp.float32)
    cross_bias = jnp.where(cross_allowed > 0.5, 0.0, NEG_INF).astype(jnp.float32)
    bias = jnp.concatenate([self_bias, cross_bias], axis=0)          # (2*BS, BS)

    out2 = pl.pallas_call(
        decoder_layer_kernel,
        out_shape=jax.ShapeDtypeStruct((B * S, D), jnp.float32),
        # grid-less: single invocation, 3 operands, everything resident in VMEM
    )(acts, bias, params_slab)
    return out2.reshape(B, S, D)


# ---------------- deterministic parameter initialization ----------------------
def _linear_init(key, out_dim, in_dim):
    kw, kb = jax.random.split(key)
    bound = 1.0 / math.sqrt(in_dim)
    w = jax.random.uniform(kw, (out_dim, in_dim), jnp.float32, -bound, bound)
    b = jax.random.uniform(kb, (out_dim,), jnp.float32, -bound, bound)
    return w, b


def init_decoder_layer_params(key):
    ks = jax.random.split(key, 12)

    def attn_params(k0, k1, k2, k3, k4):
        wq, bq = _linear_init(k0, D_HEAD * N_I, D_X)
        wk, bk = _linear_init(k1, D_HEAD * N_I, D_X)
        wv, bv = _linear_init(k2, D_HEAD * N_I, D_X)
        wr, br = _linear_init(k3, D_HEAD * N_I, D_X)
        wo, bo = _linear_init(k4, D_X, D_HEAD * N_I)
        return (wq, bq, wk, bk, wv, bv, wr, br, wo, bo)

    def ln():
        return jnp.ones((D_X,), jnp.float32), jnp.zeros((D_X,), jnp.float32)

    kan_inner = 0.1 * jax.random.normal(ks[10], (D_X, NUM_KNOTS), jnp.float32)
    kan_outer = 0.1 * jax.random.normal(ks[11], (D_X, D_X), jnp.float32)
    return {'ln1': ln(), 'self_attn': attn_params(*ks[0:5]),
            'ln2': ln(), 'enc_attn': attn_params(*ks[5:10]),
            'ln3': ln(), 'kan': (kan_inner, kan_outer),
            'ln4': ln()}


def prepare_params(p):
    """PyTorch-layout params -> one packed (R_TOTAL, 128) f32 slab:
    pre-transposed weights, per-head fused QKVR / QR / KV projections with the
    1/sqrt(d_k) score scale folded into Q, and lane-major vector rows."""
    inv_scale = 1.0 / math.sqrt(D_K)

    def fuse_self(attn):
        wq, bq, wk, bk, wv, bv, wr, br, wo, bo = attn
        cols, bvec = [], []
        for h in range(N_I):
            sl = slice(h * D_HEAD, (h + 1) * D_HEAD)
            cols += [wq.T[:, sl] * inv_scale, wk.T[:, sl], wv.T[:, sl], wr.T[:, sl]]
            bvec += [bq[sl] * inv_scale, bk[sl], bv[sl], br[sl]]
        return (jnp.concatenate(cols, 1), jnp.concatenate(bvec, 0), wo.T, bo)

    def fuse_cross(attn):
        wq, bq, wk, bk, wv, bv, wr, br, wo, bo = attn
        qr_c, qr_b, kv_c, kv_b = [], [], [], []
        for h in range(N_I):
            sl = slice(h * D_HEAD, (h + 1) * D_HEAD)
            qr_c += [wq.T[:, sl] * inv_scale, wr.T[:, sl]]
            qr_b += [bq[sl] * inv_scale, br[sl]]
            kv_c += [wk.T[:, sl], wv.T[:, sl]]
            kv_b += [bk[sl], bv[sl]]
        return (jnp.concatenate(qr_c, 1), jnp.concatenate(qr_b, 0),
                jnp.concatenate(kv_c, 1), jnp.concatenate(kv_b, 0), wo.T, bo)

    w_sa, b_sa, wo_sa_t, bo_sa = fuse_self(p['self_attn'])
    w_qr, b_qr, w_kv, b_kv, wo_ca_t, bo_ca = fuse_cross(p['enc_attn'])
    kin, kout = p['kan']                        # (D, NUM_KNOTS), (D, D)
    ln1w, ln1b = p['ln1']; ln2w, ln2b = p['ln2']
    ln3w, ln3b = p['ln3']; ln4w, ln4b = p['ln4']

    def put(slab, r0, a):
        a = jnp.asarray(a, jnp.float32)
        if a.ndim == 1:
            a = a[None, :]
        return slab.at[r0:r0 + a.shape[0], 0:a.shape[1]].set(a)

    slab = jnp.zeros((R_TOTAL, LANES), jnp.float32)
    slab = put(slab, R_W_SA_QKVR, w_sa)
    slab = put(slab, R_W_CA_QR, w_qr)
    slab = put(slab, R_W_CA_KV, w_kv)
    slab = put(slab, R_W_SA_O, wo_sa_t)
    slab = put(slab, R_W_CA_O, wo_ca_t)
    slab = put(slab, R_W_KAN_OUT, kout.T)
    slab = put(slab, R_VEC + V_B_SA_QKVR, b_sa)
    slab = put(slab, R_VEC + V_B_CA_QR, b_qr)
    slab = put(slab, R_VEC + V_B_CA_KV, b_kv)
    slab = put(slab, R_VEC + V_B_SA_O, bo_sa)
    slab = put(slab, R_VEC + V_B_CA_O, bo_ca)
    slab = put(slab, R_VEC + V_LN1W, ln1w); slab = put(slab, R_VEC + V_LN1B, ln1b)
    slab = put(slab, R_VEC + V_LN2W, ln2w); slab = put(slab, R_VEC + V_LN2B, ln2b)
    slab = put(slab, R_VEC + V_LN3W, ln3w); slab = put(slab, R_VEC + V_LN3B, ln3b)
    slab = put(slab, R_VEC + V_LN4W, ln4w); slab = put(slab, R_VEC + V_LN4B, ln4b)
    for kk in range(NUM_KNOTS - SPLINE_ORDER):
        slab = put(slab, R_VEC + V_KAN_IN0 + kk, kin[:, kk])
    return slab


if __name__ == "__main__":
    root = jax.random.PRNGKey(0)
    k_trg, k_src, k_params = jax.random.split(root, 3)

    trg = jax.random.normal(k_trg, (BATCH, SEQ, D_X), jnp.float32)
    src = jax.random.normal(k_src, (BATCH, SEQ, D_X), jnp.float32)

    # causal self-attention mask (B, 1, S, S), PyTorch broadcast layout
    causal = jnp.tril(jnp.ones((SEQ, SEQ), jnp.float32))
    trg_mask = jnp.broadcast_to(causal, (BATCH, 1, SEQ, SEQ))
    # encoder key-padding mask (B, 1, 1, S); last 2 source keys of batch 1 padded
    src_mask = jnp.ones((BATCH, 1, 1, SEQ), jnp.float32)
    src_mask = src_mask.at[1, 0, 0, SEQ - 2:].set(0.0)

    params_slab = prepare_params(init_decoder_layer_params(k_params))

    out = decoder_layer_pallas(trg, src, trg_mask, src_mask, params_slab)
    out = jax.block_until_ready(out)
    assert out.shape == (BATCH, SEQ, D_X)
    assert not bool(jnp.isnan(out).any())
    print("KERNEL_OK")
</pallas_src>

<mosaic_0001>
module attributes {stable_mosaic.version = 11 : i64} {
  func.func @decoder_layer_kernel(%arg0: memref<32x32xf32, #tpu.memory_space<vmem>>, %arg1: memref<32x16xf32, #tpu.memory_space<vmem>>, %arg2: memref<208x128xf32, #tpu.memory_space<vmem>>, %arg3: memref<16x32xf32, #tpu.memory_space<vmem>>) attributes {dimension_semantics = [], scalar_prefetch = 0 : i64, scratch_operands = 0 : i64, tpu.core_type = #tpu.core_type<tc>} {
    %c0 = arith.constant 0 : index
    %c0_0 = arith.constant 0 : index
    %0 = vector.load %arg0[%c0, %c0_0] : memref<32x32xf32, #tpu.memory_space<vmem>>, vector<16x32xf32>
    %c16 = arith.constant 16 : index
    %c0_1 = arith.constant 0 : index
    %1 = vector.load %arg0[%c16, %c0_1] : memref<32x32xf32, #tpu.memory_space<vmem>>, vector<16x32xf32>
    %c0_2 = arith.constant 0 : index
    %c0_3 = arith.constant 0 : index
    %2 = vector.load %arg1[%c0_2, %c0_3] : memref<32x16xf32, #tpu.memory_space<vmem>>, vector<16x16xf32>
    %c16_4 = arith.constant 16 : index
    %c0_5 = arith.constant 0 : index
    %3 = vector.load %arg1[%c16_4, %c0_5] : memref<32x16xf32, #tpu.memory_space<vmem>>, vector<16x16xf32>
    %cst = arith.constant dense<0.000000e+00> : vector<16xf32>
    %4 = vector.multi_reduction <add>, %0, %cst [1] : vector<16x32xf32> to vector<16xf32>
    %5 = vector.shape_cast %4 : vector<16xf32> to vector<16x1xf32>
    %cst_6 = arith.constant 3.200000e+01 : f32
    %6 = vector.broadcast %cst_6 : f32 to vector<16x1xf32>
    %7 = arith.divf %5, %6 : vector<16x1xf32>
    %8 = vector.broadcast %7 : vector<16x1xf32> to vector<16x32xf32>
    %9 = arith.subf %0, %8 : vector<16x32xf32>
    %10 = arith.mulf %9, %9 : vector<16x32xf32>
    %cst_7 = arith.constant dense<0.000000e+00> : vector<16xf32>
    %11 = vector.multi_reduction <add>, %10, %cst_7 [1] : vector<16x32xf32> to vector<16xf32>
    %12 = vector.shape_cast %11 : vector<16xf32> to vector<16x1xf32>
    %cst_8 = arith.constant 3.200000e+01 : f32
    %13 = vector.broadcast %cst_8 : f32 to vector<16x1xf32>
    %14 = arith.divf %12, %13 : vector<16x1xf32>
    %15 = vector.broadcast %7 : vector<16x1xf32> to vector<16x32xf32>
    %16 = arith.subf %0, %15 : vector<16x32xf32>
    %cst_9 = arith.constant 9.99999974E-6 : f32
    %17 = vector.broadcast %cst_9 : f32 to vector<16x1xf32>
    %18 = arith.addf %14, %17 : vector<16x1xf32>
    %19 = math.rsqrt %18 : vector<16x1xf32>
    %20 = vector.broadcast %19 : vector<16x1xf32> to vector<16x32xf32>
    %21 = arith.mulf %16, %20 : vector<16x32xf32>
    %c197 = arith.constant 197 : index
    %c0_10 = arith.constant 0 : index
    %22 = vector.load %arg2[%c197, %c0_10] : memref<208x128xf32, #tpu.memory_space<vmem>>, vector<1x32xf32>
    %23 = vector.broadcast %22 : vector<1x32xf32> to vector<16x32xf32>
    %24 = arith.mulf %21, %23 : vector<16x32xf32>
    %c198 = arith.constant 198 : index
    %c0_11 = arith.constant 0 : index
    %25 = vector.load %arg2[%c198, %c0_11] : memref<208x128xf32, #tpu.memory_space<vmem>>, vector<1x32xf32>
    %26 = vector.broadcast %25 : vector<1x32xf32> to vector<16x32xf32>
    %27 = arith.addf %24, %26 : vector<16x32xf32>
    %c0_12 = arith.constant 0 : index
    %c0_13 = arith.constant 0 : index
    %28 = vector.load %arg2[%c0_12, %c0_13] : memref<208x128xf32, #tpu.memory_space<vmem>>, vector<32x128xf32>
    %cst_14 = arith.constant dense<0.000000e+00> : vector<16x128xf32>
    %29 = tpu.matmul %27, %28, %cst_14 {dimension_numbers = #tpu.dot_dimension_numbers<[1], [0], [0], [1], [0, 0, 1, 1], [], []>} : vector<16x32xf32>, vector<32x128xf32>, vector<16x128xf32> -> vector<16x128xf32>
    %c192 = arith.constant 192 : index
    %c0_15 = arith.constant 0 : index
    %30 = vector.load %arg2[%c192, %c0_15] : memref<208x128xf32, #tpu.memory_space<vmem>>, vector<1x128xf32>
    %31 = vector.broadcast %30 : vector<1x128xf32> to vector<16x128xf32>
    %32 = arith.addf %29, %31 : vector<16x128xf32>
    %c195 = arith.constant 195 : index
    %c0_16 = arith.constant 0 : index
    %33 = vector.load %arg2[%c195, %c0_16] : memref<208x128xf32, #tpu.memory_space<vmem>>, vector<1x32xf32>
    %34 = vector.extract_strided_slice %32 {offsets = [0, 0], sizes = [16, 16], strides = [1, 1]} : vector<16x128xf32> to vector<16x16xf32>
    %35 = vector.extract_strided_slice %32 {offsets = [0, 16], sizes = [16, 16], strides = [1, 1]} : vector<16x128xf32> to vector<16x16xf32>
    %36 = vector.extract_strided_slice %32 {offsets = [0, 32], sizes = [16, 16], strides = [1, 1]} : vector<16x128xf32> to vector<16x16xf32>
    %37 = vector.extract_strided_slice %32 {offsets = [0, 48], sizes = [16, 16], strides = [1, 1]} : vector<16x128xf32> to vector<16x16xf32>
    %c96 = arith.constant 96 : index
    %c0_17 = arith.constant 0 : index
    %38 = vector.load %arg2[%c96, %c0_17] : memref<208x128xf32, #tpu.memory_space<vmem>>, vector<16x32xf32>
    %cst_18 = arith.constant dense<0.000000e+00> : vector<16x16xf32>
    %39 = tpu.matmul %34, %35, %cst_18 {dimension_numbers = #tpu.dot_dimension_numbers<[1], [1], [0], [0], [0, 0, 1, 0], [], []>} : vector<16x16xf32>, vector<16x16xf32>, vector<16x16xf32> -> vector<16x16xf32>
    %40 = arith.addf %39, %2 : vector<16x16xf32>
    %cst_19 = arith.constant dense<0xFF800000> : vector<16xf32>
    %41 = vector.multi_reduction <maximumf>, %40, %cst_19 [1] : vector<16x16xf32> to vector<16xf32>
    %42 = vector.shape_cast %41 : vector<16xf32> to vector<16x1xf32>
    %43 = vector.broadcast %42 : vector<16x1xf32> to vector<16x16xf32>
    %44 = arith.subf %40, %43 : vector<16x16xf32>
    %45 = math.exp %44 : vector<16x16xf32>
    %cst_20 = arith.constant dense<0.000000e+00> : vector<16xf32>
    %46 = vector.multi_reduction <add>, %45, %cst_20 [1] : vector<16x16xf32> to vector<16xf32>
    %47 = vector.shape_cast %46 : vector<16xf32> to vector<16x1xf32>
    %48 = tpu.reciprocal %47 {approx = true} : vector<16x1xf32> -> vector<16x1xf32>
    %49 = vector.broadcast %48 : vector<16x1xf32> to vector<16x16xf32>
    %50 = arith.mulf %45, %49 : vector<16x16xf32>
    %cst_21 = arith.constant dense<0.000000e+00> : vector<16x16xf32>
    %51 = tpu.matmul %50, %36, %cst_21 {dimension_numbers = #tpu.dot_dimension_numbers<[1], [0], [0], [1], [0, 0, 1, 1], [], []>} : vector<16x16xf32>, vector<16x16xf32>, vector<16x16xf32> -> vector<16x16xf32>
    %52 = arith.mulf %51, %37 : vector<16x16xf32>
    %cst_22 = arith.constant dense<0.000000e+00> : vector<16x32xf32>
    %53 = tpu.matmul %52, %38, %cst_22 {dimension_numbers = #tpu.dot_dimension_numbers<[1], [0], [0], [1], [0, 0, 1, 1], [], []>} : vector<16x16xf32>, vector<16x32xf32>, vector<16x32xf32> -> vector<16x32xf32>
    %54 = vector.broadcast %33 : vector<1x32xf32> to vector<16x32xf32>
    %55 = arith.addf %54, %53 : vector<16x32xf32>
    %56 = vector.extract_strided_slice %32 {offsets = [0, 64], sizes = [16, 16], strides = [1, 1]} : vector<16x128xf32> to vector<16x16xf32>
    %57 = vector.extract_strided_slice %32 {offsets = [0, 80], sizes = [16, 16], strides = [1, 1]} : vector<16x128xf32> to vector<16x16xf32>
    %58 = vector.extract_strided_slice %32 {offsets = [0, 96], sizes = [16, 16], strides = [1, 1]} : vector<16x128xf32> to vector<16x16xf32>
    %59 = vector.extract_strided_slice %32 {offsets = [0, 112], sizes = [16, 16], strides = [1, 1]} : vector<16x128xf32> to vector<16x16xf32>
    %c112 = arith.constant 112 : index
    %c0_23 = arith.constant 0 : index
    %60 = vector.load %arg2[%c112, %c0_23] : memref<208x128xf32, #tpu.memory_space<vmem>>, vector<16x32xf32>
    %cst_24 = arith.constant dense<0.000000e+00> : vector<16x16xf32>
    %61 = tpu.matmul %56, %57, %cst_24 {dimension_numbers = #tpu.dot_dimension_numbers<[1], [1], [0], [0], [0, 0, 1, 0], [], []>} : vector<16x16xf32>, vector<16x16xf32>, vector<16x16xf32> -> vector<16x16xf32>
    %62 = arith.addf %61, %2 : vector<16x16xf32>
    %cst_25 = arith.constant dense<0xFF800000> : vector<16xf32>
    %63 = vector.multi_reduction <maximumf>, %62, %cst_25 [1] : vector<16x16xf32> to vector<16xf32>
    %64 = vector.shape_cast %63 : vector<16xf32> to vector<16x1xf32>
    %65 = vector.broadcast %64 : vector<16x1xf32> to vector<16x16xf32>
    %66 = arith.subf %62, %65 : vector<16x16xf32>
    %67 = math.exp %66 : vector<16x16xf32>
    %cst_26 = arith.constant dense<0.000000e+00> : vector<16xf32>
    %68 = vector.multi_reduction <add>, %67, %cst_26 [1] : vector<16x16xf32> to vector<16xf32>
    %69 = vector.shape_cast %68 : vector<16xf32> to vector<16x1xf32>
    %70 = tpu.reciprocal %69 {approx = true} : vector<16x1xf32> -> vector<16x1xf32>
    %71 = vector.broadcast %70 : vector<16x1xf32> to vector<16x16xf32>
    %72 = arith.mulf %67, %71 : vector<16x16xf32>
    %cst_27 = arith.constant dense<0.000000e+00> : vector<16x16xf32>
    %73 = tpu.matmul %72, %58, %cst_27 {dimension_numbers = #tpu.dot_dimension_numbers<[1], [0], [0], [1], [0, 0, 1, 1], [], []>} : vector<16x16xf32>, vector<16x16xf32>, vector<16x16xf32> -> vector<16x16xf32>
    %74 = arith.mulf %73, %59 : vector<16x16xf32>
    %cst_28 = arith.constant dense<0.000000e+00> : vector<16x32xf32>
    %75 = tpu.matmul %74, %60, %cst_28 {dimension_numbers = #tpu.dot_dimension_numbers<[1], [0], [0], [1], [0, 0, 1, 1], [], []>} : vector<16x16xf32>, vector<16x32xf32>, vector<16x32xf32> -> vector<16x32xf32>
    %76 = arith.addf %55, %75 : vector<16x32xf32>
    %77 = arith.addf %0, %76 : vector<16x32xf32>
    %cst_29 = arith.constant dense<0.000000e+00> : vector<16xf32>
    %78 = vector.multi_reduction <add>, %77, %cst_29 [1] : vector<16x32xf32> to vector<16xf32>
    %79 = vector.shape_cast %78 : vector<16xf32> to vector<16x1xf32>
    %cst_30 = arith.constant 3.200000e+01 : f32
    %80 = vector.broadcast %cst_30 : f32 to vector<16x1xf32>
    %81 = arith.divf %79, %80 : vector<16x1xf32>
    %82 = vector.broadcast %81 : vector<16x1xf32> to vector<16x32xf32>
    %83 = arith.subf %77, %82 : vector<16x32xf32>
    %84 = arith.mulf %83, %83 : vector<16x32xf32>
    %cst_31 = arith.constant dense<0.000000e+00> : vector<16xf32>
    %85 = vector.multi_reduction <add>, %84, %cst_31 [1] : vector<16x32xf32> to vector<16xf32>
    %86 = vector.shape_cast %85 : vector<16xf32> to vector<16x1xf32>
    %cst_32 = arith.constant 3.200000e+01 : f32
    %87 = vector.broadcast %cst_32 : f32 to vector<16x1xf32>
    %88 = arith.divf %86, %87 : vector<16x1xf32>
    %89 = vector.broadcast %81 : vector<16x1xf32> to vector<16x32xf32>
    %90 = arith.subf %77, %89 : vector<16x32xf32>
    %cst_33 = arith.constant 9.99999974E-6 : f32
    %91 = vector.broadcast %cst_33 : f32 to vector<16x1xf32>
    %92 = arith.addf %88, %91 : vector<16x1xf32>
    %93 = math.rsqrt %92 : vector<16x1xf32>
    %94 = vector.broadcast %93 : vector<16x1xf32> to vector<16x32xf32>
    %95 = arith.mulf %90, %94 : vector<16x32xf32>
    %c199 = arith.constant 199 : index
    %c0_34 = arith.constant 0 : index
    %96 = vector.load %arg2[%c199, %c0_34] : memref<208x128xf32, #tpu.memory_space<vmem>>, vector<1x32xf32>
    %97 = vector.broadcast %96 : vector<1x32xf32> to vector<16x32xf32>
    %98 = arith.mulf %95, %97 : vector<16x32xf32>
    %c200 = arith.constant 200 : index
    %c0_35 = arith.constant 0 : index
    %99 = vector.load %arg2[%c200, %c0_35] : memref<208x128xf32, #tpu.memory_space<vmem>>, vector<1x32xf32>
    %100 = vector.broadcast %99 : vector<1x32xf32> to vector<16x32xf32>
    %101 = arith.addf %98, %100 : vector<16x32xf32>
    %c32 = arith.constant 32 : index
    %c0_36 = arith.constant 0 : index
    %102 = vector.load %arg2[%c32, %c0_36] : memref<208x128xf32, #tpu.memory_space<vmem>>, vector<32x64xf32>
    %cst_37 = arith.constant dense<0.000000e+00> : vector<16x64xf32>
    %103 = tpu.matmul %101, %102, %cst_37 {dimension_numbers = #tpu.dot_dimension_numbers<[1], [0], [0], [1], [0, 0, 1, 1], [], []>} : vector<16x32xf32>, vector<32x64xf32>, vector<16x64xf32> -> vector<16x64xf32>
    %c193 = arith.constant 193 : index
    %c0_38 = arith.constant 0 : index
    %104 = vector.load %arg2[%c193, %c0_38] : memref<208x128xf32, #tpu.memory_space<vmem>>, vector<1x64xf32>
    %105 = vector.broadcast %104 : vector<1x64xf32> to vector<16x64xf32>
    %106 = arith.addf %103, %105 : vector<16x64xf32>
    %c64 = arith.constant 64 : index
    %c0_39 = arith.constant 0 : index
    %107 = vector.load %arg2[%c64, %c0_39] : memref<208x128xf32, #tpu.memory_space<vmem>>, vector<32x64xf32>
    %cst_40 = arith.constant dense<0.000000e+00> : vector<16x64xf32>
    %108 = tpu.matmul %1, %107, %cst_40 {dimension_numbers = #tpu.dot_dimension_numbers<[1], [0], [0], [1], [0, 0, 1, 1], [], []>} : vector<16x32xf32>, vector<32x64xf32>, vector<16x64xf32> -> vector<16x64xf32>
    %c194 = arith.constant 194 : index
    %c0_41 = arith.constant 0 : index
    %109 = vector.load %arg2[%c194, %c0_41] : memref<208x128xf32, #tpu.memory_space<vmem>>, vector<1x64xf32>
    %110 = vector.broadcast %109 : vector<1x64xf32> to vector<16x64xf32>
    %111 = arith.addf %108, %110 : vector<16x64xf32>
    %c196 = arith.constant 196 : index
    %c0_42 = arith.constant 0 : index
    %112 = vector.load %arg2[%c196, %c0_42] : memref<208x128xf32, #tpu.memory_space<vmem>>, vector<1x32xf32>
    %113 = vector.extract_strided_slice %106 {offsets = [0, 0], sizes = [16, 16], strides = [1, 1]} : vector<16x64xf32> to vector<16x16xf32>
    %114 = vector.extract_strided_slice %111 {offsets = [0, 0], sizes = [16, 16], strides = [1, 1]} : vector<16x64xf32> to vector<16x16xf32>
    %115 = vector.extract_strided_slice %111 {offsets = [0, 16], sizes = [16, 16], strides = [1, 1]} : vector<16x64xf32> to vector<16x16xf32>
    %116 = vector.extract_strided_slice %106 {offsets = [0, 16], sizes = [16, 16], strides = [1, 1]} : vector<16x64xf32> to vector<16x16xf32>
    %c128 = arith.constant 128 : index
    %c0_43 = arith.constant 0 : index
    %117 = vector.load %arg2[%c128, %c0_43] : memref<208x128xf32, #tpu.memory_space<vmem>>, vector<16x32xf32>
    %cst_44 = arith.constant dense<0.000000e+00> : vector<16x16xf32>
    %118 = tpu.matmul %113, %114, %cst_44 {dimension_numbers = #tpu.dot_dimension_numbers<[1], [1], [0], [0], [0, 0, 1, 0], [], []>} : vector<16x16xf32>, vector<16x16xf32>, vector<16x16xf32> -> vector<16x16xf32>
    %119 = arith.addf %118, %3 : vector<16x16xf32>
    %cst_45 = arith.constant dense<0xFF800000> : vector<16xf32>
    %120 = vector.multi_reduction <maximumf>, %119, %cst_45 [1] : vector<16x16xf32> to vector<16xf32>
    %121 = vector.shape_cast %120 : vector<16xf32> to vector<16x1xf32>
    %122 = vector.broadcast %121 : vector<16x1xf32> to vector<16x16xf32>
    %123 = arith.subf %119, %122 : vector<16x16xf32>
    %124 = math.exp %123 : vector<16x16xf32>
    %cst_46 = arith.constant dense<0.000000e+00> : vector<16xf32>
    %125 = vector.multi_reduction <add>, %124, %cst_46 [1] : vector<16x16xf32> to vector<16xf32>
    %126 = vector.shape_cast %125 : vector<16xf32> to vector<16x1xf32>
    %127 = tpu.reciprocal %126 {approx = true} : vector<16x1xf32> -> vector<16x1xf32>
    %128 = vector.broadcast %127 : vector<16x1xf32> to vector<16x16xf32>
    %129 = arith.mulf %124, %128 : vector<16x16xf32>
    %cst_47 = arith.constant dense<0.000000e+00> : vector<16x16xf32>
    %130 = tpu.matmul %129, %115, %cst_47 {dimension_numbers = #tpu.dot_dimension_numbers<[1], [0], [0], [1], [0, 0, 1, 1], [], []>} : vector<16x16xf32>, vector<16x16xf32>, vector<16x16xf32> -> vector<16x16xf32>
    %131 = arith.mulf %130, %116 : vector<16x16xf32>
    %cst_48 = arith.constant dense<0.000000e+00> : vector<16x32xf32>
    %132 = tpu.matmul %131, %117, %cst_48 {dimension_numbers = #tpu.dot_dimension_numbers<[1], [0], [0], [1], [0, 0, 1, 1], [], []>} : vector<16x16xf32>, vector<16x32xf32>, vector<16x32xf32> -> vector<16x32xf32>
    %133 = vector.broadcast %112 : vector<1x32xf32> to vector<16x32xf32>
    %134 = arith.addf %133, %132 : vector<16x32xf32>
    %135 = vector.extract_strided_slice %106 {offsets = [0, 32], sizes = [16, 16], strides = [1, 1]} : vector<16x64xf32> to vector<16x16xf32>
    %136 = vector.extract_strided_slice %111 {offsets = [0, 32], sizes = [16, 16], strides = [1, 1]} : vector<16x64xf32> to vector<16x16xf32>
    %137 = vector.extract_strided_slice %111 {offsets = [0, 48], sizes = [16, 16], strides = [1, 1]} : vector<16x64xf32> to vector<16x16xf32>
    %138 = vector.extract_strided_slice %106 {offsets = [0, 48], sizes = [16, 16], strides = [1, 1]} : vector<16x64xf32> to vector<16x16xf32>
    %c144 = arith.constant 144 : index
    %c0_49 = arith.constant 0 : index
    %139 = vector.load %arg2[%c144, %c0_49] : memref<208x128xf32, #tpu.memory_space<vmem>>, vector<16x32xf32>
    %cst_50 = arith.constant dense<0.000000e+00> : vector<16x16xf32>
    %140 = tpu.matmul %135, %136, %cst_50 {dimension_numbers = #tpu.dot_dimension_numbers<[1], [1], [0], [0], [0, 0, 1, 0], [], []>} : vector<16x16xf32>, vector<16x16xf32>, vector<16x16xf32> -> vector<16x16xf32>
    %141 = arith.addf %140, %3 : vector<16x16xf32>
    %cst_51 = arith.constant dense<0xFF800000> : vector<16xf32>
    %142 = vector.multi_reduction <maximumf>, %141, %cst_51 [1] : vector<16x16xf32> to vector<16xf32>
    %143 = vector.shape_cast %142 : vector<16xf32> to vector<16x1xf32>
    %144 = vector.broadcast %143 : vector<16x1xf32> to vector<16x16xf32>
    %145 = arith.subf %141, %144 : vector<16x16xf32>
    %146 = math.exp %145 : vector<16x16xf32>
    %cst_52 = arith.constant dense<0.000000e+00> : vector<16xf32>
    %147 = vector.multi_reduction <add>, %146, %cst_52 [1] : vector<16x16xf32> to vector<16xf32>
    %148 = vector.shape_cast %147 : vector<16xf32> to vector<16x1xf32>
    %149 = tpu.reciprocal %148 {approx = true} : vector<16x1xf32> -> vector<16x1xf32>
    %150 = vector.broadcast %149 : vector<16x1xf32> to vector<16x16xf32>
    %151 = arith.mulf %146, %150 : vector<16x16xf32>
    %cst_53 = arith.constant dense<0.000000e+00> : vector<16x16xf32>
    %152 = tpu.matmul %151, %137, %cst_53 {dimension_numbers = #tpu.dot_dimension_numbers<[1], [0], [0], [1], [0, 0, 1, 1], [], []>} : vector<16x16xf32>, vector<16x16xf32>, vector<16x16xf32> -> vector<16x16xf32>
    %153 = arith.mulf %152, %138 : vector<16x16xf32>
    %cst_54 = arith.constant dense<0.000000e+00> : vector<16x32xf32>
    %154 = tpu.matmul %153, %139, %cst_54 {dimension_numbers = #tpu.dot_dimension_numbers<[1], [0], [0], [1], [0, 0, 1, 1], [], []>} : vector<16x16xf32>, vector<16x32xf32>, vector<16x32xf32> -> vector<16x32xf32>
    %155 = arith.addf %134, %154 : vector<16x32xf32>
    %156 = arith.addf %77, %155 : vector<16x32xf32>
    %cst_55 = arith.constant dense<0.000000e+00> : vector<16xf32>
    %157 = vector.multi_reduction <add>, %156, %cst_55 [1] : vector<16x32xf32> to vector<16xf32>
    %158 = vector.shape_cast %157 : vector<16xf32> to vector<16x1xf32>
    %cst_56 = arith.constant 3.200000e+01 : f32
    %159 = vector.broadcast %cst_56 : f32 to vector<16x1xf32>
    %160 = arith.divf %158, %159 : vector<16x1xf32>
    %161 = vector.broadcast %160 : vector<16x1xf32> to vector<16x32xf32>
    %162 = arith.subf %156, %161 : vector<16x32xf32>
    %163 = arith.mulf %162, %162 : vector<16x32xf32>
    %cst_57 = arith.constant dense<0.000000e+00> : vector<16xf32>
    %164 = vector.multi_reduction <add>, %163, %cst_57 [1] : vector<16x32xf32> to vector<16xf32>
    %165 = vector.shape_cast %164 : vector<16xf32> to vector<16x1xf32>
    %cst_58 = arith.constant 3.200000e+01 : f32
    %166 = vector.broadcast %cst_58 : f32 to vector<16x1xf32>
    %167 = arith.divf %165, %166 : vector<16x1xf32>
    %168 = vector.broadcast %160 : vector<16x1xf32> to vector<16x32xf32>
    %169 = arith.subf %156, %168 : vector<16x32xf32>
    %cst_59 = arith.constant 9.99999974E-6 : f32
    %170 = vector.broadcast %cst_59 : f32 to vector<16x1xf32>
    %171 = arith.addf %167, %170 : vector<16x1xf32>
    %172 = math.rsqrt %171 : vector<16x1xf32>
    %173 = vector.broadcast %172 : vector<16x1xf32> to vector<16x32xf32>
    %174 = arith.mulf %169, %173 : vector<16x32xf32>
    %c201 = arith.constant 201 : index
    %c0_60 = arith.constant 0 : index
    %175 = vector.load %arg2[%c201, %c0_60] : memref<208x128xf32, #tpu.memory_space<vmem>>, vector<1x32xf32>
    %176 = vector.broadcast %175 : vector<1x32xf32> to vector<16x32xf32>
    %177 = arith.mulf %174, %176 : vector<16x32xf32>
    %c202 = arith.constant 202 : index
    %c0_61 = arith.constant 0 : index
    %178 = vector.load %arg2[%c202, %c0_61] : memref<208x128xf32, #tpu.memory_space<vmem>>, vector<1x32xf32>
    %179 = vector.broadcast %178 : vector<1x32xf32> to vector<16x32xf32>
    %180 = arith.addf %177, %179 : vector<16x32xf32>
    %181 = math.tanh %180 : vector<16x32xf32>
    %cst_62 = arith.constant -1.000000e+00 : f32
    %182 = vector.broadcast %cst_62 : f32 to vector<16x32xf32>
    %183 = arith.cmpf oge, %181, %182 : vector<16x32xf32>
    %cst_63 = arith.constant -0.714285731 : f32
    %184 = vector.broadcast %cst_63 : f32 to vector<16x32xf32>
    %185 = arith.cmpf olt, %181, %184 : vector<16x32xf32>
    %186 = arith.andi %183, %185 : vector<16x32xi1>
    %187 = arith.extui %186 : vector<16x32xi1> to vector<16x32xi32>
    %188 = arith.sitofp %187 : vector<16x32xi32> to vector<16x32xf32>
    %cst_64 = arith.constant -0.714285731 : f32
    %189 = vector.broadcast %cst_64 : f32 to vector<16x32xf32>
    %190 = arith.cmpf oge, %181, %189 : vector<16x32xf32>
    %cst_65 = arith.constant -0.428571433 : f32
    %191 = vector.broadcast %cst_65 : f32 to vector<16x32xf32>
    %192 = arith.cmpf olt, %181, %191 : vector<16x32xf32>
    %193 = arith.andi %190, %192 : vector<16x32xi1>
    %194 = arith.extui %193 : vector<16x32xi1> to vector<16x32xi32>
    %195 = arith.sitofp %194 : vector<16x32xi32> to vector<16x32xf32>
    %cst_66 = arith.constant -0.428571433 : f32
    %196 = vector.broadcast %cst_66 : f32 to vector<16x32xf32>
    %197 = arith.cmpf oge, %181, %196 : vector<16x32xf32>
    %cst_67 = arith.constant -0.142857149 : f32
    %198 = vector.broadcast %cst_67 : f32 to vector<16x32xf32>
    %199 = arith.cmpf olt, %181, %198 : vector<16x32xf32>
    %200 = arith.andi %197, %199 : vector<16x32xi1>
    %201 = arith.extui %200 : vector<16x32xi1> to vector<16x32xi32>
    %202 = arith.sitofp %201 : vector<16x32xi32> to vector<16x32xf32>
    %cst_68 = arith.constant -0.142857149 : f32
    %203 = vector.broadcast %cst_68 : f32 to vector<16x32xf32>
    %204 = arith.cmpf oge, %181, %203 : vector<16x32xf32>
    %cst_69 = arith.constant 0.142857149 : f32
    %205 = vector.broadcast %cst_69 : f32 to vector<16x32xf32>
    %206 = arith.cmpf olt, %181, %205 : vector<16x32xf32>
    %207 = arith.andi %204, %206 : vector<16x32xi1>
    %208 = arith.extui %207 : vector<16x32xi1> to vector<16x32xi32>
    %209 = arith.sitofp %208 : vector<16x32xi32> to vector<16x32xf32>
    %cst_70 = arith.constant 0.142857149 : f32
    %210 = vector.broadcast %cst_70 : f32 to vector<16x32xf32>
    %211 = arith.cmpf oge, %181, %210 : vector<16x32xf32>
    %cst_71 = arith.constant 0.428571433 : f32
    %212 = vector.broadcast %cst_71 : f32 to vector<16x32xf32>
    %213 = arith.cmpf olt, %181, %212 : vector<16x32xf32>
    %214 = arith.andi %211, %213 : vector<16x32xi1>
    %215 = arith.extui %214 : vector<16x32xi1> to vector<16x32xi32>
    %216 = arith.sitofp %215 : vector<16x32xi32> to vector<16x32xf32>
    %cst_72 = arith.constant 0.000000e+00 : f32
    %217 = vector.broadcast %cst_72 : f32 to vector<16x32xf32>
    %cst_73 = arith.constant 0.000000e+00 : f32
    %218 = vector.broadcast %cst_73 : f32 to vector<16x32xf32>
    %cst_74 = arith.constant 7.14583349 : f32
    %219 = vector.broadcast %cst_74 : f32 to vector<16x32xf32>
    %220 = arith.mulf %219, %181 : vector<16x32xf32>
    %cst_75 = arith.constant 2.143750e+01 : f32
    %221 = vector.broadcast %cst_75 : f32 to vector<16x32xf32>
    %222 = arith.addf %220, %221 : vector<16x32xf32>
    %223 = arith.mulf %222, %181 : vector<16x32xf32>
    %cst_76 = arith.constant 2.143750e+01 : f32
    %224 = vector.broadcast %cst_76 : f32 to vector<16x32xf32>
    %225 = arith.addf %223, %224 : vector<16x32xf32>
    %226 = arith.mulf %225, %181 : vector<16x32xf32>
    %cst_77 = arith.constant 7.14583349 : f32
    %227 = vector.broadcast %cst_77 : f32 to vector<16x32xf32>
    %228 = arith.addf %226, %227 : vector<16x32xf32>
    %229 = arith.mulf %188, %228 : vector<16x32xf32>
    %230 = arith.addf %218, %229 : vector<16x32xf32>
    %cst_78 = arith.constant -2.143750e+01 : f32
    %231 = vector.broadcast %cst_78 : f32 to vector<16x32xf32>
    %232 = arith.mulf %231, %181 : vector<16x32xf32>
    %cst_79 = arith.constant -3.981250e+01 : f32
    %233 = vector.broadcast %cst_79 : f32 to vector<16x32xf32>
    %234 = arith.addf %232, %233 : vector<16x32xf32>
    %235 = arith.mulf %234, %181 : vector<16x32xf32>
    %cst_80 = arith.constant -2.231250e+01 : f32
    %236 = vector.broadcast %cst_80 : f32 to vector<16x32xf32>
    %237 = arith.addf %235, %236 : vector<16x32xf32>
    %238 = arith.mulf %237, %181 : vector<16x32xf32>
    %cst_81 = arith.constant -3.27083325 : f32
    %239 = vector.broadcast %cst_81 : f32 to vector<16x32xf32>
    %240 = arith.addf %238, %239 : vector<16x32xf32>
    %241 = arith.mulf %195, %240 : vector<16x32xf32>
    %242 = arith.addf %230, %241 : vector<16x32xf32>
    %cst_82 = arith.constant 2.143750e+01 : f32
    %243 = vector.broadcast %cst_82 : f32 to vector<16x32xf32>
    %244 = arith.mulf %243, %181 : vector<16x32xf32>
    %cst_83 = arith.constant 1.531250e+01 : f32
    %245 = vector.broadcast %cst_83 : f32 to vector<16x32xf32>
    %246 = arith.addf %244, %245 : vector<16x32xf32>
    %247 = arith.mulf %246, %181 : vector<16x32xf32>
    %cst_84 = arith.constant 1.312500e+00 : f32
    %248 = vector.broadcast %cst_84 : f32 to vector<16x32xf32>
    %249 = arith.addf %247, %248 : vector<16x32xf32>
    %250 = arith.mulf %249, %181 : vector<16x32xf32>
    %cst_85 = arith.constant 0.104166664 : f32
    %251 = vector.broadcast %cst_85 : f32 to vector<16x32xf32>
    %252 = arith.addf %250, %251 : vector<16x32xf32>
    %253 = arith.mulf %202, %252 : vector<16x32xf32>
    %254 = arith.addf %242, %253 : vector<16x32xf32>
    %cst_86 = arith.constant -7.14583349 : f32
    %255 = vector.broadcast %cst_86 : f32 to vector<16x32xf32>
    %256 = arith.mulf %255, %181 : vector<16x32xf32>
    %cst_87 = arith.constant 3.062500e+00 : f32
    %257 = vector.broadcast %cst_87 : f32 to vector<16x32xf32>
    %258 = arith.addf %256, %257 : vector<16x32xf32>
    %259 = arith.mulf %258, %181 : vector<16x32xf32>
    %cst_88 = arith.constant -4.375000e-01 : f32
    %260 = vector.broadcast %cst_88 : f32 to vector<16x32xf32>
    %261 = arith.addf %259, %260 : vector<16x32xf32>
    %262 = arith.mulf %261, %181 : vector<16x32xf32>
    %cst_89 = arith.constant 0.020833334 : f32
    %263 = vector.broadcast %cst_89 : f32 to vector<16x32xf32>
    %264 = arith.addf %262, %263 : vector<16x32xf32>
    %265 = arith.mulf %209, %264 : vector<16x32xf32>
    %266 = arith.addf %254, %265 : vector<16x32xf32>
    %c205 = arith.constant 205 : index
    %c0_90 = arith.constant 0 : index
    %267 = vector.load %arg2[%c205, %c0_90] : memref<208x128xf32, #tpu.memory_space<vmem>>, vector<1x32xf32>
    %268 = vector.broadcast %267 : vector<1x32xf32> to vector<16x32xf32>
    %269 = arith.mulf %266, %268 : vector<16x32xf32>
    %270 = arith.addf %217, %269 : vector<16x32xf32>
    %cst_91 = arith.constant 0.000000e+00 : f32
    %271 = vector.broadcast %cst_91 : f32 to vector<16x32xf32>
    %cst_92 = arith.constant 7.14583349 : f32
    %272 = vector.broadcast %cst_92 : f32 to vector<16x32xf32>
    %273 = arith.mulf %272, %181 : vector<16x32xf32>
    %cst_93 = arith.constant 1.531250e+01 : f32
    %274 = vector.broadcast %cst_93 : f32 to vector<16x32xf32>
    %275 = arith.addf %273, %274 : vector<16x32xf32>
    %276 = arith.mulf %275, %181 : vector<16x32xf32>
    %cst_94 = arith.constant 1.093750e+01 : f32
    %277 = vector.broadcast %cst_94 : f32 to vector<16x32xf32>
    %278 = arith.addf %276, %277 : vector<16x32xf32>
    %279 = arith.mulf %278, %181 : vector<16x32xf32>
    %cst_95 = arith.constant 2.60416675 : f32
    %280 = vector.broadcast %cst_95 : f32 to vector<16x32xf32>
    %281 = arith.addf %279, %280 : vector<16x32xf32>
    %282 = arith.mulf %195, %281 : vector<16x32xf32>
    %283 = arith.addf %271, %282 : vector<16x32xf32>
    %cst_96 = arith.constant -2.143750e+01 : f32
    %284 = vector.broadcast %cst_96 : f32 to vector<16x32xf32>
    %285 = arith.mulf %284, %181 : vector<16x32xf32>
    %cst_97 = arith.constant -2.143750e+01 : f32
    %286 = vector.broadcast %cst_97 : f32 to vector<16x32xf32>
    %287 = arith.addf %285, %286 : vector<16x32xf32>
    %288 = arith.mulf %287, %181 : vector<16x32xf32>
    %cst_98 = arith.constant -4.812500e+00 : f32
    %289 = vector.broadcast %cst_98 : f32 to vector<16x32xf32>
    %290 = arith.addf %288, %289 : vector<16x32xf32>
    %291 = arith.mulf %290, %181 : vector<16x32xf32>
    %cst_99 = arith.constant 0.354166657 : f32
    %292 = vector.broadcast %cst_99 : f32 to vector<16x32xf32>
    %293 = arith.addf %291, %292 : vector<16x32xf32>
    %294 = arith.mulf %202, %293 : vector<16x32xf32>
    %295 = arith.addf %283, %294 : vector<16x32xf32>
    %cst_100 = arith.constant 2.143750e+01 : f32
    %296 = vector.broadcast %cst_100 : f32 to vector<16x32xf32>
    %297 = arith.mulf %296, %181 : vector<16x32xf32>
    %cst_101 = arith.constant -3.062500e+00 : f32
    %298 = vector.broadcast %cst_101 : f32 to vector<16x32xf32>
    %299 = arith.addf %297, %298 : vector<16x32xf32>
    %300 = arith.mulf %299, %181 : vector<16x32xf32>
    %cst_102 = arith.constant -2.187500e+00 : f32
    %301 = vector.broadcast %cst_102 : f32 to vector<16x32xf32>
    %302 = arith.addf %300, %301 : vector<16x32xf32>
    %303 = arith.mulf %302, %181 : vector<16x32xf32>
    %cst_103 = arith.constant 0.479166657 : f32
    %304 = vector.broadcast %cst_103 : f32 to vector<16x32xf32>
    %305 = arith.addf %303, %304 : vector<16x32xf32>
    %306 = arith.mulf %209, %305 : vector<16x32xf32>
    %307 = arith.addf %295, %306 : vector<16x32xf32>
    %cst_104 = arith.constant -7.14583349 : f32
    %308 = vector.broadcast %cst_104 : f32 to vector<16x32xf32>
    %309 = arith.mulf %308, %181 : vector<16x32xf32>
    %cst_105 = arith.constant 9.187500e+00 : f32
    %310 = vector.broadcast %cst_105 : f32 to vector<16x32xf32>
    %311 = arith.addf %309, %310 : vector<16x32xf32>
    %312 = arith.mulf %311, %181 : vector<16x32xf32>
    %cst_106 = arith.constant -3.937500e+00 : f32
    %313 = vector.broadcast %cst_106 : f32 to vector<16x32xf32>
    %314 = arith.addf %312, %313 : vector<16x32xf32>
    %315 = arith.mulf %314, %181 : vector<16x32xf32>
    %cst_107 = arith.constant 5.625000e-01 : f32
    %316 = vector.broadcast %cst_107 : f32 to vector<16x32xf32>
    %317 = arith.addf %315, %316 : vector<16x32xf32>
    %318 = arith.mulf %216, %317 : vector<16x32xf32>
    %319 = arith.addf %307, %318 : vector<16x32xf32>
    %c206 = arith.constant 206 : index
    %c0_108 = arith.constant 0 : index
    %320 = vector.load %arg2[%c206, %c0_108] : memref<208x128xf32, #tpu.memory_space<vmem>>, vector<1x32xf32>
    %321 = vector.broadcast %320 : vector<1x32xf32> to vector<16x32xf32>
    %322 = arith.mulf %319, %321 : vector<16x32xf32>
    %323 = arith.addf %270, %322 : vector<16x32xf32>
    %c160 = arith.constant 160 : index
    %c0_109 = arith.constant 0 : index
    %324 = vector.load %arg2[%c160, %c0_109] : memref<208x128xf32, #tpu.memory_space<vmem>>, vector<32x32xf32>
    %cst_110 = arith.constant dense<0.000000e+00> : vector<16x32xf32>
    %325 = tpu.matmul %323, %324, %cst_110 {dimension_numbers = #tpu.dot_dimension_numbers<[1], [0], [0], [1], [0, 0, 1, 1], [], []>} : vector<16x32xf32>, vector<32x32xf32>, vector<16x32xf32> -> vector<16x32xf32>
    %326 = arith.addf %156, %325 : vector<16x32xf32>
    %cst_111 = arith.constant dense<0.000000e+00> : vector<16xf32>
    %327 = vector.multi_reduction <add>, %326, %cst_111 [1] : vector<16x32xf32> to vector<16xf32>
    %328 = vector.shape_cast %327 : vector<16xf32> to vector<16x1xf32>
    %cst_112 = arith.constant 3.200000e+01 : f32
    %329 = vector.broadcast %cst_112 : f32 to vector<16x1xf32>
    %330 = arith.divf %328, %329 : vector<16x1xf32>
    %331 = vector.broadcast %330 : vector<16x1xf32> to vector<16x32xf32>
    %332 = arith.subf %326, %331 : vector<16x32xf32>
    %333 = arith.mulf %332, %332 : vector<16x32xf32>
    %cst_113 = arith.constant dense<0.000000e+00> : vector<16xf32>
    %334 = vector.multi_reduction <add>, %333, %cst_113 [1] : vector<16x32xf32> to vector<16xf32>
    %335 = vector.shape_cast %334 : vector<16xf32> to vector<16x1xf32>
    %cst_114 = arith.constant 3.200000e+01 : f32
    %336 = vector.broadcast %cst_114 : f32 to vector<16x1xf32>
    %337 = arith.divf %335, %336 : vector<16x1xf32>
    %338 = vector.broadcast %330 : vector<16x1xf32> to vector<16x32xf32>
    %339 = arith.subf %326, %338 : vector<16x32xf32>
    %cst_115 = arith.constant 9.99999974E-6 : f32
    %340 = vector.broadcast %cst_115 : f32 to vector<16x1xf32>
    %341 = arith.addf %337, %340 : vector<16x1xf32>
    %342 = math.rsqrt %341 : vector<16x1xf32>
    %343 = vector.broadcast %342 : vector<16x1xf32> to vector<16x32xf32>
    %344 = arith.mulf %339, %343 : vector<16x32xf32>
    %c203 = arith.constant 203 : index
    %c0_116 = arith.constant 0 : index
    %345 = vector.load %arg2[%c203, %c0_116] : memref<208x128xf32, #tpu.memory_space<vmem>>, vector<1x32xf32>
    %346 = vector.broadcast %345 : vector<1x32xf32> to vector<16x32xf32>
    %347 = arith.mulf %344, %346 : vector<16x32xf32>
    %c204 = arith.constant 204 : index
    %c0_117 = arith.constant 0 : index
    %348 = vector.load %arg2[%c204, %c0_117] : memref<208x128xf32, #tpu.memory_space<vmem>>, vector<1x32xf32>
    %349 = vector.broadcast %348 : vector<1x32xf32> to vector<16x32xf32>
    %350 = arith.addf %347, %349 : vector<16x32xf32>
    %c0_118 = arith.constant 0 : index
    %c0_119 = arith.constant 0 : index
    %351 = vector.load %arg3[%c0_118, %c0_119] : memref<16x32xf32, #tpu.memory_space<vmem>>, vector<16x32xf32>
    tpu.vector_store %arg3[%c0_118, %c0_119], %350 {strides = array<i32>} : memref<16x32xf32, #tpu.memory_space<vmem>>, vector<16x32xf32>,
    return
  }
}

</mosaic_0001>

<bundles_post_ra>
// kernel: decoder_layer_pallas.1
= control target key start
LH: loop header
LB: loop body
LE: loop exit
PB: predicated region body
PF: predicated region fallthrough
CT: control target
= control target key end

     0   :  { %vm23_vm0 = vcmask 261120   ;;  %s2896_s0 = inlined_call_operand.vmem [shape: f32[32,32], index: 0, kind: input, shape index: {}]   ;;  %s2897_s1 = inlined_call_operand.vmem [shape: f32[32,16], index: 1, kind: input, shape index: {}]   ;;  %s2898_s2 = inlined_call_operand.vmem [shape: f32[208,128], index: 2, kind: input, shape index: {}]   ;;  %s2899_s3 = inlined_call_operand.hbm [shape: f32[16,32], index: 3, kind: output, shape index: {}]  }
   0x1   :  { %v2448_v0 = vld [vmem:[%s2896_s0] sm:$0xff]  ;;  %v2453_v1 = vld [vmem:[%s2896_s0 + $0x8] sm:$0xff] }
   0x2   :  { %8 = vsyncpa [#allocation3], 0  ;;  %v24_v2 = vsel %vm23_vm0, %v2448_v0, 0.0  ;;  %v27_v3 = vsel %vm23_vm0, %v2453_v1, 0.0  ;;  %v65_v14 = vld [vmem:[%s2898_s2] sm:$0xff]  ;;  %v66_v15 = vld [vmem:[%s2898_s2 + $0x8] sm:$0xff] }
   0x3   :  { %25 = vadd.xlane.f32.xlu0 %v24_v2  ;;  %v67_v16 = vld [vmem:[%s2898_s2 + $0x10] sm:$0xff]  ;;  %v2196_v17 = vpack.c.bf16 %v66_v15, %v65_v14  ;;  %v68_v18 = vld [vmem:[%s2898_s2 + $0x18] sm:$0xff]  ;;  %v1931_v27 = vld [vmem:[%s2898_s2 + $0xc5] ss:$0 sm:$0xff]  ;;  %vm164_vm1 = vcmask 130048   ;;  %s2414_s30 = smov 48  }
   0x4   :  { %v2200_v19 = vpack.c.bf16 %v68_v18, %v67_v16  ;;  %v1932_v29 = vld [vmem:[%s2898_s2 + $0xc6] ss:$0 sm:$0xff]  ;;  %v1933_v36 = vld [vmem:[%s2898_s2 + $0xc0] ss:$0 sm:$0xff]  ;;  %s2415_s4 = smov 112   ;;  %s2416_s5 = smov 64   ;;  %vm2503_vm2 = vmpackc.low %vm164_vm1, %vm164_vm1 }
   0x5   :  { %2197 = vmatprep.subr.bf16.mxu0 %v2196_v17  ;;  %v20_v53 = vld [vmem:[%s2897_s1 + $0x8] sm:$0xff]  ;;  %v19_v54 = vld [vmem:[%s2897_s1] sm:$0xff]  ;;  %s2417_s10 = smov 96   ;;  %s2418_s11 = smov 80  }
   0x6   :  { %2199 = vmatpush3.bf16.msra.mxu0 %v2196_v17  ;;  %s2419_s12 = smov 16   ;;  %s2420_s13 = smov 32  }
   0x7   :  { %28 = vadd.xlane.f32.xlu0 %v27_v3  ;;  %2201 = vmatprep.subr.bf16.mxu0 %v2200_v19 }
   0xa   :  { %2203 = vmatpush3.bf16.msra.mxu0 %v2200_v19 }
  0x90   :  { %v26_v4 = vpop.xlane.xlu0 %25 }
  0x91   :  { %v31_v5 = vmul.f32 0.03125, %v26_v4 }
  0x93   :  { %v33_v6 = vsub.f32 %v2448_v0, %v31_v5 }
  0x94   :  { %v29_v7 = vpop.xlane.xlu0 %28 }
  0x95   :  { %v32_v8 = vmul.f32 0.03125, %v29_v7  ;;  %v35_v9 = vmul.f32 %v33_v6, %v33_v6 }
  0x97   :  { %v34_v10 = vsub.f32 %v2453_v1, %v32_v8  ;;  %v37_v11 = vsel %vm23_vm0, %v35_v9, 0.0 }
  0x98   :  { %38 = vadd.xlane.f32.xlu1 %v37_v11 }
  0x99   :  { %v36_v12 = vmul.f32 %v34_v10, %v34_v10 }
  0x9b   :  { %v40_v13 = vsel %vm23_vm0, %v36_v12, 0.0 }
  0x9c   :  { %41 = vadd.xlane.f32.xlu1 %v40_v13 }
 0x125   :  { %v39_v20 = vpop.xlane.xlu1 %38 }
 0x126   :  { %v43_v21 = vmul.f32 0.03125, %v39_v20 }
 0x128   :  { %v45_v22 = vadd.f32 1e-05, %v43_v21 }
 0x129   :  { %v42_v23 = vpop.xlane.xlu1 %41 }
 0x12a   :  { %2338 = vrsqrt.f32 %v45_v22  ;;  %v44_v24 = vmul.f32 0.03125, %v42_v23 }
 0x12c   :  { %v46_v25 = vadd.f32 1e-05, %v44_v24 }
 0x12e   :  { %2340 = vrsqrt.f32 %v46_v25 }
 0x134   :  { %v2339_v26 = vpop.eup %2338 }
 0x135   :  { %v49_v28 = vmul.f32 %v2339_v26, %v33_v6 }
 0x137   :  { %v56_v30 = vmul.f32 %v1931_v27, %v49_v28  ;;  %v156_v28 = vld [vmem:[%s2898_s2 + $0x60] sm:$0xff] }
 0x138   :  { %v2341_v31 = vpop.eup %2340 }
 0x139   :  { %v50_v32 = vmul.f32 %v2341_v31, %v34_v10  ;;  %v63_v33 = vadd.f32 %v1932_v29, %v56_v30 }
 0x13b   :  { %v57_v34 = vmul.f32 %v1931_v27, %v50_v32  ;;  %2076 = vmatprep.mubr.msk.f32.mxu0 %vm23_vm0, %v63_v33 }
 0x13d   :  { %v64_v35 = vadd.f32 %v1932_v29, %v57_v34  ;;  %v157_v29 = vld [vmem:[%s2898_s2 + $0x68] sm:$0xff] }
 0x13e   :  { %v2214_v33 = vpack.c.bf16 %v157_v29, %v156_v28  ;;  %v788_v28 = vld [vmem:[%s2898_s2 + $0x28] sm:$0xff] }
 0x13f   :  { %2077 = vmatmul.mubr.msk.f32.vlgmr.msra.gmra.mrb[0].mxu0 %vm23_vm0, %v64_v35 }
 0x212   :  { %v2078_v37 = vpop.f32.mrb[0].mxu0 }
 0x213   :  { %v2486_v38 = vadd.f32 %v2078_v37, %v1933_v36  ;;  %v146_v39 = vpop.f32.mrb[1].mxu0 }
 0x214   :  { %v2488_v40 = vadd.f32 %v1933_v36, %v146_v39 }
 0x216   :  { %2083 = vmatprep.mubr.msk.f32.mxu1 %vm164_vm1, %v2488_v40  ;;  %v2494_v41 = vpack.i.bf16 %v2486_v38, %v2488_v40 }
 0x218   :  { %2309 = vrot.lane.b32.xlu1 %v2494_v41, %s2414_s30  ;;  %2304 = vrot.lane.b32.xlu0 %v2494_v41, %s2415_s4 }
 0x21c   :  { %454 = vrot.lane.b32.xlu1 %v2488_v40, %s2416_s5 }
 0x220   :  { %456 = vrot.lane.b32.xlu1 %v2486_v38, %s2416_s5 }
 0x28a   :  { %v2310_v42 = vpop.permute.xlu1 %2309  ;;  %v2305_v43 = vpop.permute.xlu0 %2304 }
 0x28b   :  { %v2312_v44 = vunpack.i.h.bf16 %v2310_v42  ;;  %v2311_v45 = vunpack.i.l.bf16 %v2310_v42  ;;  %v2307_v46 = vunpack.i.h.bf16 %v2305_v43  ;;  %v2306_v47 = vunpack.i.l.bf16 %v2305_v43 }
 0x28d   :  { %v2218_v49 = vpack.c.bf16 %v2312_v44, %v2311_v45  ;;  %v2204_v50 = vpack.c.bf16 %v2307_v46, %v2306_v47 }
 0x28e   :  { %v455_v51 = vpop.permute.xlu1 %454 }
 0x28f   :  { %2206 = vmatprep.subr.msk.bf16.mxu1 %vm2503_vm2, %v2204_v50  ;;  %2220 = vmatprep.subr.msk.bf16.mxu0 %vm2503_vm2, %v2218_v49 }
 0x290   :  { %2104 = vmatprep.mubr.msk.f32.mxu0 %vm164_vm1, %v455_v51  ;;  %2209 = vmatpush3.bf16.xpose.msk.msra.mxu1 %vm2503_vm2, %v2204_v50 }
 0x291   :  { %2223 = vmatpush3.bf16.xpose.msk.msra.mxu0 %vm2503_vm2, %v2218_v49 }
 0x292   :  { %v457_v52 = vpop.permute.xlu1 %456 }
 0x297   :  { %2084 = vmatmul.mubr.msk.f32.vlgmr.msra.gmra.mrb[0].mxu1 %vm164_vm1, %v2486_v38 }
 0x298   :  { %2105 = vmatmul.mubr.msk.f32.vlgmr.msra.gmra.mrb[2].mxu0 %vm164_vm1, %v457_v52 }
 0x36a   :  { %v2085_v55 = vpop.f32.mrb[0].mxu1 }
 0x36b   :  { %v245_v56 = vadd.f32 %v2085_v55, %v20_v53  ;;  %v2106_v57 = vpop.f32.mrb[2].mxu0  ;;  %v239_v58 = vpop.f32.mrb[1].mxu1  ;;  %v452_v55 = vld [vmem:[%s2898_s2 + $0x70] sm:$0xff] }
 0x36c   :  { %v240_v59 = vadd.f32 %v239_v58, %v19_v54  ;;  %v536_v60 = vpop.f32.mrb[3].mxu0  ;;  %v542_v2 = vadd.f32 %v2106_v57, %v20_v53 }
 0x36d   :  { %v537_v61 = vadd.f32 %v536_v60, %v19_v54  ;;  %v251_v62 = vsel %vm164_vm1, %v245_v56, -inf }
 0x36e   :  { %252 = vmax.xlane.f32.xlu1 %v251_v62  ;;  %v248_v63 = vsel %vm164_vm1, %v240_v59, -inf  ;;  %v548_v4 = vsel %vm164_vm1, %v542_v2, -inf }
 0x36f   :  { %249 = vmax.xlane.f32.xlu0 %v248_v63  ;;  %v545_v3 = vsel %vm164_vm1, %v537_v61, -inf }
 0x372   :  { %546 = vmax.xlane.f32.xlu1 %v545_v3 }
 0x376   :  { %549 = vmax.xlane.f32.xlu1 %v548_v4 }
 0x3fb   :  { %v253_v5 = vpop.xlane.xlu1 %252 }
 0x3fc   :  { %v255_v6 = vsub.f32 %v245_v56, %v253_v5  ;;  %v250_v7 = vpop.xlane.xlu0 %249  ;;  %v453_v56 = vld [vmem:[%s2898_s2 + $0x78] sm:$0xff] }
 0x3fd   :  { %v254_v8 = vsub.f32 %v240_v59, %v250_v7  ;;  %v2228_v57 = vpack.c.bf16 %v453_v56, %v452_v55 }
 0x3fe   :  { %v258_v9 = vmul.f32 1.442695, %v255_v6 }
 0x3ff   :  { %v256_v10 = vmul.f32 1.442695, %v254_v8  ;;  %v547_v11 = vpop.xlane.xlu1 %546 }
 0x400   :  { %2342 = vpow2.f32 %v258_v9  ;;  %v551_v12 = vsub.f32 %v537_v61, %v547_v11 }
 0x401   :  { %2344 = vpow2.f32 %v256_v10 }
 0x402   :  { %v553_v15 = vmul.f32 1.442695, %v551_v12 }
 0x403   :  { %v550_v13 = vpop.xlane.xlu1 %549 }
 0x404   :  { %v552_v14 = vsub.f32 %v542_v2, %v550_v13  ;;  %v1944_v2 = vld [vmem:[%s2898_s2 + $0xc3] ss:$0 sm:$0xff] }
 0x406   :  { %v555_v16 = vmul.f32 1.442695, %v552_v14 }
 0x408   :  { %2346 = vpow2.f32 %v555_v16 }
 0x409   :  { %2348 = vpow2.f32 %v553_v15 }
 0x40a   :  { %v2343_v17 = vpop.eup %2342 }
 0x40b   :  { %v263_v18 = vsel %vm164_vm1, %v2343_v17, 0.0  ;;  %v2345_v19 = vpop.eup %2344 }
 0x40c   :  { %264 = vadd.xlane.f32.xlu0 %v263_v18  ;;  %v260_v20 = vsel %vm164_vm1, %v2345_v19, 0.0 }
 0x410   :  { %261 = vadd.xlane.f32.xlu0 %v260_v20  ;;  %v878_v20 = vld [vmem:[%s2898_s2 + $0x48] sm:$0xff] }
 0x412   :  { %v2347_v21 = vpop.eup %2346 }
 0x413   :  { %v560_v22 = vsel %vm164_vm1, %v2347_v21, 0.0  ;;  %v2349_v23 = vpop.eup %2348 }
 0x414   :  { %561 = vadd.xlane.f32.xlu1 %v560_v22  ;;  %v557_v24 = vsel %vm164_vm1, %v2349_v23, 0.0  ;;  %v879_v22 = vld [vmem:[%s2898_s2 + $0x50] sm:$0xff] }
 0x418   :  { %558 = vadd.xlane.f32.xlu1 %v557_v24 }
 0x426   :  { %2314 = vrot.lane.b32.xlu0 %v2494_v41, %s2417_s10 }
 0x429   :  { %357 = vrot.lane.b32.xlu1 %v2488_v40, %s2418_s11 }
 0x42a   :  { %359 = vrot.lane.b32.xlu0 %v2486_v38, %s2418_s11 }
 0x42d   :  { %656 = vrot.lane.b32.xlu1 %v2486_v38, %s2419_s12 }
 0x42e   :  { %2319 = vrot.lane.b32.xlu0 %v2494_v41, %s2420_s13 }
 0x432   :  { %654 = vrot.lane.b32.xlu0 %v2488_v40, %s2419_s12 }
 0x499   :  { %v265_v25 = vpop.xlane.xlu0 %264 }
 0x49a   :  { %2350 = vrcp.f32 %v265_v25  ;;  %v17_v25 = vld [vmem:[%s2896_s0 + $0x10] sm:$0xff] }
 0x49d   :  { %v262_v26 = vpop.xlane.xlu0 %261 }
 0x49e   :  { %2352 = vrcp.f32 %v262_v26  ;;  %v18_v26 = vld [vmem:[%s2896_s0 + $0x18] sm:$0xff] }
 0x4a1   :  { %v2315_v27 = vpop.permute.xlu0 %2314  ;;  %v562_v43 = vpop.xlane.xlu1 %561 }
 0x4a2   :  { %v2317_v30 = vunpack.i.h.bf16 %v2315_v27  ;;  %v2316_v31 = vunpack.i.l.bf16 %v2315_v27  ;;  %v787_v27 = vld [vmem:[%s2898_s2 + $0x20] sm:$0xff] }
 0x4a3   :  { %v2232_v29 = vpack.c.bf16 %v788_v28, %v787_v27 }
 0x4a4   :  { %v2210_v32 = vpack.c.bf16 %v2317_v30, %v2316_v31  ;;  %v2351_v35 = vpop.eup %2350  ;;  %v789_v30 = vld [vmem:[%s2898_s2 + $0x30] sm:$0xff]  ;;  %v790_v31 = vld [vmem:[%s2898_s2 + $0x38] sm:$0xff] }
 0x4a5   :  { %v360_v34 = vpop.permute.xlu0 %359  ;;  %v269_v39 = vmul.f32 %v2351_v35, %v2343_v17  ;;  %v559_v44 = vpop.xlane.xlu1 %558  ;;  %2233 = vmatprep.subr.bf16.mxu0 %v2232_v29 }
 0x4a6   :  { %2211 = vmatprep.subr.bf16.mxu1 %v2210_v32  ;;  %2354 = vrcp.f32 %v559_v44  ;;  %2235 = vmatpush3.bf16.msra.mxu0 %v2232_v29 }
 0x4a7   :  { %2213 = vmatpush3.bf16.msra.mxu1 %v2210_v32  ;;  %2356 = vrcp.f32 %v562_v43  ;;  %v2236_v32 = vpack.c.bf16 %v790_v31, %v789_v30 }
 0x4a8   :  { %v2353_v36 = vpop.eup %2352  ;;  %2215 = vmatprep.subr.bf16.mxu1 %v2214_v33 }
 0x4a9   :  { %v2320_v37 = vpop.permute.xlu0 %2319  ;;  %v268_v38 = vmul.f32 %v2353_v36, %v2345_v19  ;;  %v358_v47 = vpop.permute.xlu1 %357  ;;  %v877_v19 = vld [vmem:[%s2898_s2 + $0x40] sm:$0xff]  ;;  %2237 = vmatprep.subr.bf16.mxu0 %v2236_v32 }
 0x4aa   :  { %v2322_v40 = vunpack.i.h.bf16 %v2320_v37  ;;  %v2321_v41 = vunpack.i.l.bf16 %v2320_v37  ;;  %2239 = vmatpush3.bf16.msra.mxu0 %v2236_v32 }
 0x4ab   :  { %2090 = vmatprep.mubr.msk.f32.mxu1 %vm164_vm1, %v268_v38 }
 0x4ac   :  { %v2224_v42 = vpack.c.bf16 %v2322_v40, %v2321_v41  ;;  %2091 = vmatmul.mubr.msk.f32.vlgmr.msra.gmra.mrb[2].mxu1 %vm164_vm1, %v269_v39  ;;  %v1953_v40 = vld [vmem:[%s2898_s2 + $0xc7] ss:$0 sm:$0xff] }
 0x4ad   :  { %2217 = vmatpush3.bf16.msra.mxu1 %v2214_v33  ;;  %v655_v59 = vpop.permute.xlu0 %654  ;;  %v657_v61 = vpop.permute.xlu1 %656 }
 0x4ae   :  { %2225 = vmatprep.subr.bf16.mxu1 %v2224_v42 }
 0x4b0   :  { %v2355_v46 = vpop.eup %2354 }
 0x4b1   :  { %v2357_v52 = vpop.eup %2356  ;;  %v565_v53 = vmul.f32 %v2355_v46, %v2349_v23  ;;  %v880_v23 = vld [vmem:[%s2898_s2 + $0x58] sm:$0xff] }
 0x4b2   :  { %v566_v54 = vmul.f32 %v2357_v52, %v2347_v21  ;;  %v2240_v21 = vpack.c.bf16 %v878_v20, %v877_v19  ;;  %v2244_v24 = vpack.c.bf16 %v880_v23, %v879_v22 }
 0x57f   :  { %v2092_v45 = vpop.f32.mrb[2].mxu1 }
 0x580   :  { %v348_v49 = vpop.f32.mrb[3].mxu1  ;;  %v364_v51 = vmul.f32 %v2092_v45, %v360_v34 }
 0x581   :  { %v363_v50 = vmul.f32 %v358_v47, %v348_v49 }
 0x583   :  { %2097 = vmatprep.mubr.msk.f32.mxu1 %vm164_vm1, %v363_v50  ;;  %v1958_v50 = vld [vmem:[%s2898_s2 + $0xc2] ss:$0 sm:$0xff] }
 0x584   :  { %2098 = vmatmul.mubr.msk.f32.vlgmr.msra.gmra.mrb[4].mxu1 %vm164_vm1, %v364_v51 }
 0x585   :  { %2227 = vmatpush3.bf16.msra.mxu1 %v2224_v42  ;;  %2111 = vmatprep.mubr.msk.f32.mxu1 %vm164_vm1, %v565_v53  ;;  %v1954_v42 = vld [vmem:[%s2898_s2 + $0xc8] ss:$0 sm:$0xff] }
 0x586   :  { %2229 = vmatprep.subr.bf16.mxu1 %v2228_v57 }
 0x588   :  { %2112 = vmatmul.mubr.msk.f32.vlgmr.msra.gmra.mrb[6].mxu1 %vm164_vm1, %v566_v54 }
 0x589   :  { %2231 = vmatpush3.bf16.msra.mxu1 %v2228_v57 }
 0x58a   :  { %2241 = vmatprep.subr.bf16.mxu1 %v2240_v21 }
 0x65b   :  { %v2113_v58 = vpop.f32.mrb[6].mxu1 }
 0x65c   :  { %v645_v60 = vpop.f32.mrb[7].mxu1  ;;  %v661_v63 = vmul.f32 %v2113_v58, %v657_v61  ;;  %v1955_v61 = vld [vmem:[%s2898_s2 + $0xc1] ss:$0 sm:$0xff] }
 0x65d   :  { %v660_v62 = vmul.f32 %v655_v59, %v645_v60 }
 0x65f   :  { %2118 = vmatprep.mubr.msk.f32.mxu1 %vm164_vm1, %v660_v62 }
 0x660   :  { %2119 = vmatmul.mubr.msk.f32.vlgmr.msra.gmra.mrb[4].mxu1 %vm164_vm1, %v661_v63 }
 0x661   :  { %2243 = vmatpush3.bf16.msra.mxu1 %v2240_v21  ;;  %2140 = vmatprep.mubr.msk.f32.mxu1 %vm23_vm0, %v17_v25 }
 0x662   :  { %2245 = vmatprep.subr.bf16.mxu1 %v2244_v24 }
 0x665   :  { %2247 = vmatpush3.bf16.msra.mxu1 %v2244_v24 }
 0x668   :  { %2141 = vmatmul.mubr.msk.f32.vlgmr.msra.gmra.mrb[8].mxu1 %vm23_vm0, %v18_v26 }
 0x733   :  { %v2120_v3 = vpop.f32.mrb[4].mxu1 }
 0x734   :  { %v2284_v4 = vadd.f32 %v2120_v3, %v1944_v2  ;;  %v734_v5 = vpop.f32.mrb[5].mxu1 }
 0x735   :  { %v2285_v6 = vadd.f32 %v1944_v2, %v734_v5 }
 0x736   :  { %v2566_v7 = vadd.f32 %v2284_v4, %v2453_v1 }
 0x737   :  { %v2569_v8 = vadd.f32 %v2285_v6, %v2448_v0  ;;  %v22_v6 = vld [vmem:[%s2897_s1 + $0x18] sm:$0xff] }
 0x738   :  { %v750_v9 = vsel %vm23_vm0, %v2566_v7, 0.0 }
 0x739   :  { %751 = vadd.xlane.f32.xlu1 %v750_v9  ;;  %v747_v10 = vsel %vm23_vm0, %v2569_v8, 0.0  ;;  %v21_v9 = vld [vmem:[%s2897_s1 + $0x10] sm:$0xff] }
 0x73a   :  { %748 = vadd.xlane.f32.xlu0 %v747_v10 }
 0x73b   :  { %v2142_v51 = vpop.f32.mrb[8].mxu1 }
 0x73c   :  { %v964_v52 = vadd.f32 %v2142_v51, %v1958_v50  ;;  %v958_v53 = vpop.f32.mrb[9].mxu1 }
 0x73d   :  { %v959_v54 = vadd.f32 %v1958_v50, %v958_v53 }
 0x73f   :  { %v2248_v55 = vpack.c.bf16 %v964_v52, %v959_v54  ;;  %v2323_v56 = vpack.i.bf16 %v964_v52, %v959_v54 }
 0x741   :  { %2250 = vmatprep.subr.msk.bf16.mxu0 %vm2503_vm2, %v2248_v55 }
 0x7c6   :  { %v752_v11 = vpop.xlane.xlu1 %751 }
 0x7c7   :  { %v754_v12 = vmul.f32 0.03125, %v752_v11  ;;  %v749_v13 = vpop.xlane.xlu0 %748 }
 0x7c8   :  { %v753_v14 = vmul.f32 0.03125, %v749_v13 }
 0x7c9   :  { %v756_v15 = vsub.f32 %v2566_v7, %v754_v12 }
 0x7ca   :  { %v755_v1 = vsub.f32 %v2569_v8, %v753_v14 }
 0x7cb   :  { %v758_v17 = vmul.f32 %v756_v15, %v756_v15 }
 0x7cc   :  { %v757_v16 = vmul.f32 %v755_v1, %v755_v1 }
 0x7cd   :  { %v762_v18 = vsel %vm23_vm0, %v758_v17, 0.0 }
 0x7ce   :  { %v759_v0 = vsel %vm23_vm0, %v757_v16, 0.0 }
 0x7cf   :  { %760 = vadd.xlane.f32.xlu0 %v759_v0 }
 0x7d3   :  { %763 = vadd.xlane.f32.xlu0 %v762_v18 }
 0x7e9   :  { %2324 = vrot.lane.b32.xlu0 %v2323_v56, %s2417_s10 }
 0x85c   :  { %v761_v33 = vpop.xlane.xlu0 %760 }
 0x85d   :  { %v765_v34 = vmul.f32 0.03125, %v761_v33  ;;  %v968_v33 = vld [vmem:[%s2898_s2 + $0x80] sm:$0xff] }
 0x85f   :  { %v767_v35 = vadd.f32 1e-05, %v765_v34  ;;  %v969_v34 = vld [vmem:[%s2898_s2 + $0x88] sm:$0xff] }
 0x860   :  { %v764_v36 = vpop.xlane.xlu0 %763 }
 0x861   :  { %2358 = vrsqrt.f32 %v767_v35  ;;  %v766_v37 = vmul.f32 0.03125, %v764_v36  ;;  %v2258_v35 = vpack.c.bf16 %v969_v34, %v968_v33  ;;  %v1787_v33 = vld [vmem:[%s2898_s2 + $0xa8] sm:$0xff]  ;;  %v1788_v34 = vld [vmem:[%s2898_s2 + $0xb0] sm:$0xff] }
 0x863   :  { %v768_v38 = vadd.f32 1e-05, %v766_v37 }
 0x864   :  { %v2325_v57 = vpop.permute.xlu0 %2324 }
 0x865   :  { %2360 = vrsqrt.f32 %v768_v38  ;;  %v2327_v58 = vunpack.i.h.bf16 %v2325_v57  ;;  %v2326_v59 = vunpack.i.l.bf16 %v2325_v57 }
 0x867   :  { %v2262_v60 = vpack.c.bf16 %v2327_v58, %v2326_v59 }
 0x86b   :  { %v2359_v39 = vpop.eup %2358 }
 0x86c   :  { %v771_v41 = vmul.f32 %v2359_v39, %v755_v1 }
 0x86e   :  { %v778_v43 = vmul.f32 %v1953_v40, %v771_v41 }
 0x86f   :  { %v2361_v44 = vpop.eup %2360 }
 0x870   :  { %v772_v45 = vmul.f32 %v2361_v44, %v756_v15  ;;  %v785_v46 = vadd.f32 %v1954_v42, %v778_v43 }
 0x872   :  { %v779_v47 = vmul.f32 %v1953_v40, %v772_v45  ;;  %2129 = vmatprep.mubr.msk.f32.mxu0 %vm23_vm0, %v785_v46 }
 0x874   :  { %v786_v49 = vadd.f32 %v1954_v42, %v779_v47 }
 0x876   :  { %2130 = vmatmul.mubr.msk.f32.vlgmr.msra.gmra.mrb[4].mxu0 %vm23_vm0, %v786_v49 }
 0x877   :  { %2253 = vmatpush3.bf16.xpose.msk.msra.mxu0 %vm2503_vm2, %v2248_v55 }
 0x878   :  { %2264 = vmatprep.subr.msk.bf16.mxu0 %vm2503_vm2, %v2262_v60 }
 0x949   :  { %v2131_v62 = vpop.f32.mrb[4].mxu0 }
 0x94a   :  { %v868_v63 = vpop.f32.mrb[5].mxu0  ;;  %v2632_v3 = vadd.f32 %v2131_v62, %v1955_v61 }
 0x94b   :  { %v869_v2 = vadd.f32 %v1955_v61, %v868_v63 }
 0x94d   :  { %1263 = vrot.lane.b32.xlu1 %v869_v2, %s2417_s10  ;;  %2147 = vmatprep.mubr.msk.f32.mxu0 %vm164_vm1, %v869_v2 }
 0x94e   :  { %2148 = vmatmul.mubr.msk.f32.vlgmr.msra.gmra.mrb[6].mxu0 %vm164_vm1, %v2632_v3 }
 0x94f   :  { %2267 = vmatpush3.bf16.xpose.msk.msra.mxu0 %vm2503_vm2, %v2262_v60 }
 0x951   :  { %1265 = vrot.lane.b32.xlu1 %v2632_v3, %s2417_s10  ;;  %s2422_s10 = smov [#allocation2]  }
 0x9bf   :  { %v1264_v4 = vpop.permute.xlu1 %1263 }
 0x9c0   :  { %2168 = vmatprep.mubr.msk.f32.mxu0 %vm164_vm1, %v1264_v4 }
 0x9c3   :  { %v1266_v5 = vpop.permute.xlu1 %1265 }
 0x9c4   :  { %2169 = vmatmul.mubr.msk.f32.vlgmr.msra.gmra.mrb[8].mxu0 %vm164_vm1, %v1266_v5 }
 0xa21   :  { %v2149_v10 = vpop.f32.mrb[6].mxu0 }
 0xa22   :  { %v1054_v48 = vadd.f32 %v2149_v10, %v22_v6  ;;  %v1048_v11 = vpop.f32.mrb[7].mxu0  ;;  %v1262_v10 = vld [vmem:[%s2898_s2 + $0x98] sm:$0xff] }
 0xa23   :  { %v1049_v12 = vadd.f32 %v1048_v11, %v21_v9 }
 0xa24   :  { %v1060_v13 = vsel %vm164_vm1, %v1054_v48, -inf }
 0xa25   :  { %1061 = vmax.xlane.f32.xlu0 %v1060_v13  ;;  %v1057_v14 = vsel %vm164_vm1, %v1049_v12, -inf }
 0xa26   :  { %1058 = vmax.xlane.f32.xlu1 %v1057_v14 }
 0xa37   :  { %2329 = vrot.lane.b32.xlu1 %v2323_v56, %s2415_s4 }
 0xa3b   :  { %1166 = vrot.lane.b32.xlu1 %v869_v2, %s2415_s4 }
 0xa3f   :  { %2334 = vrot.lane.b32.xlu1 %v2323_v56, %s2418_s11 }
 0xa43   :  { %1463 = vrot.lane.b32.xlu1 %v869_v2, %s2418_s11 }
 0xa47   :  { %1465 = vrot.lane.b32.xlu1 %v2632_v3, %s2418_s11  ;;  %s1920_s11 = sshll.u32 %s2422_s10, 4  ;;  %s1921_s11 = int_to_ptr.vmem [resolvable:$true] %s1920_s11 }
 0xa48   :  { %s2390_s5 = scalar_lea.vmem %s1921_s11, 256  ;;  %p2395_p1 = scmp.lt.s32.totalorder %s1921_s11, %s1921_s11 }
 0xa49   :  { %p2391_p0 = scmp.ne.s32.totalorder %s1921_s11, %s2390_s5  ;;  %p2396_p2 = scmp.lt.s32.totalorder %s2390_s5, %s2390_s5 }
 0xa4b   :  { %p2397_p3 = por %p2396_p2, %p2395_p1 }
 0xa4d   :  { %p2398_p4 = pnand %p2397_p3, %p2391_p0 }
 0xa97   :  { %v2170_v15 = vpop.f32.mrb[8].mxu0 }
 0xa98   :  { %v1345_v1 = vpop.f32.mrb[9].mxu0  ;;  %v1351_v30 = vadd.f32 %v2170_v15, %v22_v6 }
 0xa99   :  { %v1346_v28 = vadd.f32 %v1345_v1, %v21_v9  ;;  %v1261_v9 = vld [vmem:[%s2898_s2 + $0x90] sm:$0xff] }
 0xa9a   :  { %v1357_v32 = vsel %vm164_vm1, %v1351_v30, -inf }
 0xa9b   :  { %v1354_v31 = vsel %vm164_vm1, %v1346_v28, -inf }
 0xab2   :  { %v1062_v16 = vpop.xlane.xlu0 %1061 }
 0xab3   :  { %v1064_v0 = vsub.f32 %v1054_v48, %v1062_v16  ;;  %v1059_v17 = vpop.xlane.xlu1 %1058  ;;  %v2272_v48 = vpack.c.bf16 %v1262_v10, %v1261_v9  ;;  %v1969_v16 = vld [vmem:[%s2898_s2 + $0xc4] ss:$0 sm:$0xff] }
 0xab4   :  { %v1063_v18 = vsub.f32 %v1049_v12, %v1059_v17 }
 0xab5   :  { %v1067_v19 = vmul.f32 1.442695, %v1064_v0 }
 0xab6   :  { %v1065_v20 = vmul.f32 1.442695, %v1063_v18 }
 0xab7   :  { %v2330_v21 = vpop.permute.xlu1 %2329 }
 0xab8   :  { %2362 = vpow2.f32 %v1065_v20  ;;  %v2332_v22 = vunpack.i.h.bf16 %v2330_v21  ;;  %v2331_v23 = vunpack.i.l.bf16 %v2330_v21 }
 0xab9   :  { %2364 = vpow2.f32 %v1067_v19 }
 0xaba   :  { %v2254_v24 = vpack.c.bf16 %v2332_v22, %v2331_v23 }
 0xabb   :  { %v1167_v38 = vpop.permute.xlu1 %1166 }
 0xabc   :  { %2255 = vmatprep.subr.bf16.mxu1 %v2254_v24 }
 0xabd   :  { %2257 = vmatpush3.bf16.msra.mxu1 %v2254_v24 }
 0xabe   :  { %2259 = vmatprep.subr.bf16.mxu1 %v2258_v35 }
 0xabf   :  { %v2335_v41 = vpop.permute.xlu1 %2334 }
 0xac0   :  { %v2337_v46 = vunpack.i.h.bf16 %v2335_v41  ;;  %v2336_v47 = vunpack.i.l.bf16 %v2335_v41 }
 0xac2   :  { %v2363_v25 = vpop.eup %2362  ;;  %v2268_v53 = vpack.c.bf16 %v2337_v46, %v2336_v47 }
 0xac3   :  { %v1069_v26 = vsel %vm164_vm1, %v2363_v25, 0.0  ;;  %v2365_v27 = vpop.eup %2364  ;;  %v1464_v11 = vpop.permute.xlu1 %1463 }
 0xac4   :  { %1070 = vadd.xlane.f32.xlu0 %v1069_v26  ;;  %v1072_v29 = vsel %vm164_vm1, %v2365_v27, 0.0 }
 0xac7   :  { %v1466_v14 = vpop.permute.xlu1 %1465 }
 0xac8   :  { %1073 = vadd.xlane.f32.xlu0 %v1072_v29 }
 0xacc   :  { %1355 = vmax.xlane.f32.xlu0 %v1354_v31 }
 0xad0   :  { %1358 = vmax.xlane.f32.xlu0 %v1357_v32  ;;  %v1786_v32 = vld [vmem:[%s2898_s2 + $0xa0] sm:$0xff] }
 0xb51   :  { %v1071_v36 = vpop.xlane.xlu0 %1070 }
 0xb52   :  { %2366 = vrcp.f32 %v1071_v36  ;;  %v1789_v36 = vld [vmem:[%s2898_s2 + $0xb8] sm:$0xff] }
 0xb55   :  { %v1074_v37 = vpop.xlane.xlu0 %1073 }
 0xb56   :  { %2368 = vrcp.f32 %v1074_v37  ;;  %v2280_v37 = vpack.c.bf16 %v1789_v36, %v1788_v34 }
 0xb59   :  { %v1356_v39 = vpop.xlane.xlu0 %1355 }
 0xb5a   :  { %v1360_v42 = vsub.f32 %v1346_v28, %v1356_v39 }
 0xb5c   :  { %v2367_v40 = vpop.eup %2366  ;;  %v1362_v50 = vmul.f32 1.442695, %v1360_v42 }
 0xb5d   :  { %v1359_v43 = vpop.xlane.xlu0 %1358  ;;  %v1077_v44 = vmul.f32 %v2367_v40, %v2363_v25 }
 0xb5e   :  { %v1361_v45 = vsub.f32 %v1351_v30, %v1359_v43 }
 0xb5f   :  { %2154 = vmatprep.mubr.msk.f32.mxu1 %vm164_vm1, %v1077_v44 }
 0xb60   :  { %v2369_v49 = vpop.eup %2368  ;;  %v1364_v51 = vmul.f32 1.442695, %v1361_v45  ;;  %v1978_v45 = vld [vmem:[%s2898_s2 + $0xc9] ss:$0 sm:$0xff] }
 0xb61   :  { %v1078_v52 = vmul.f32 %v2369_v49, %v2365_v27  ;;  %v1979_v49 = vld [vmem:[%s2898_s2 + $0xca] ss:$0 sm:$0xff] }
 0xb62   :  { %2370 = vpow2.f32 %v1364_v51 }
 0xb63   :  { %2155 = vmatmul.mubr.msk.f32.vlgmr.msra.gmra.mrb[10].mxu1 %vm164_vm1, %v1078_v52  ;;  %2372 = vpow2.f32 %v1362_v50 }
 0xb64   :  { %2261 = vmatpush3.bf16.msra.mxu1 %v2258_v35  ;;  %v2276_v35 = vpack.c.bf16 %v1787_v33, %v1786_v32 }
 0xb65   :  { %2269 = vmatprep.subr.bf16.mxu1 %v2268_v53 }
 0xb66   :  { %2277 = vmatprep.subr.bf16.mxu0 %v2276_v35 }
 0xb67   :  { %2279 = vmatpush3.bf16.msra.mxu0 %v2276_v35 }
 0xb68   :  { %2281 = vmatprep.subr.bf16.mxu0 %v2280_v37 }
 0xb6b   :  { %2283 = vmatpush3.bf16.msra.mxu0 %v2280_v37 }
 0xb6c   :  { %v2371_v54 = vpop.eup %2370 }
 0xb6d   :  { %v1369_v55 = vsel %vm164_vm1, %v2371_v54, 0.0  ;;  %v2373_v56 = vpop.eup %2372 }
 0xb6e   :  { %1370 = vadd.xlane.f32.xlu0 %v1369_v55  ;;  %v1366_v57 = vsel %vm164_vm1, %v2373_v56, 0.0 }
 0xb72   :  { %1367 = vadd.xlane.f32.xlu0 %v1366_v57 }
 0xb88   :  { %1168 = vrot.lane.b32.xlu0 %v2632_v3, %s2415_s4 }
 0xbfb   :  { %v1371_v58 = vpop.xlane.xlu0 %1370 }
 0xbff   :  { %v1368_v59 = vpop.xlane.xlu0 %1367 }
 0xc00   :  { %2374 = vrcp.f32 %v1368_v59 }
 0xc01   :  { %2376 = vrcp.f32 %v1371_v58 }
 0xc03   :  { %v1169_v63 = vpop.permute.xlu0 %1168 }
 0xc0a   :  { %v2375_v61 = vpop.eup %2374 }
 0xc0b   :  { %v2377_v5 = vpop.eup %2376  ;;  %v1374_v6 = vmul.f32 %v2375_v61, %v2373_v56 }
 0xc0c   :  { %v1375_v3 = vmul.f32 %v2377_v5, %v2371_v54 }
 0xc36   :  { %v2156_v60 = vpop.f32.mrb[10].mxu1 }
 0xc37   :  { %v1157_v62 = vpop.f32.mrb[11].mxu1  ;;  %v1173_v4 = vmul.f32 %v2156_v60, %v1169_v63  ;;  %v2421_v63 = vmov 0.0  }
 0xc38   :  { %v1172_v2 = vmul.f32 %v1167_v38, %v1157_v62 }
 0xc3a   :  { %2161 = vmatprep.mubr.msk.f32.mxu1 %vm164_vm1, %v1172_v2 }
 0xc3b   :  { %2162 = vmatmul.mubr.msk.f32.vlgmr.msra.gmra.mrb[12].mxu1 %vm164_vm1, %v1173_v4 }
 0xc3c   :  { %2271 = vmatpush3.bf16.msra.mxu1 %v2268_v53  ;;  %2175 = vmatprep.mubr.msk.f32.mxu1 %vm164_vm1, %v1374_v6 }
 0xc3d   :  { %2273 = vmatprep.subr.bf16.mxu1 %v2272_v48 }
 0xc3f   :  { %2176 = vmatmul.mubr.msk.f32.vlgmr.msra.gmra.mrb[14].mxu1 %vm164_vm1, %v1375_v3 }
 0xc40   :  { %2275 = vmatpush3.bf16.msra.mxu1 %v2272_v48 }
 0xd12   :  { %v2177_v12 = vpop.f32.mrb[14].mxu1 }
 0xd13   :  { %v1454_v13 = vpop.f32.mrb[15].mxu1  ;;  %v1470_v1 = vmul.f32 %v2177_v12, %v1466_v14 }
 0xd14   :  { %v1469_v15 = vmul.f32 %v1464_v11, %v1454_v13 }
 0xd16   :  { %2182 = vmatprep.mubr.msk.f32.mxu1 %vm164_vm1, %v1469_v15 }
 0xd17   :  { %2183 = vmatmul.mubr.msk.f32.vlgmr.msra.gmra.mrb[12].mxu1 %vm164_vm1, %v1470_v1 }
 0xdea   :  { %v2184_v0 = vpop.f32.mrb[12].mxu1 }
 0xdeb   :  { %v2286_v17 = vadd.f32 %v2184_v0, %v1969_v16  ;;  %v1543_v18 = vpop.f32.mrb[13].mxu1 }
 0xdec   :  { %v2287_v19 = vadd.f32 %v1969_v16, %v1543_v18 }
 0xded   :  { %v2690_v20 = vadd.f32 %v2286_v17, %v2566_v7 }
 0xdee   :  { %v2693_v21 = vadd.f32 %v2287_v19, %v2569_v8 }
 0xdef   :  { %v1559_v22 = vsel %vm23_vm0, %v2690_v20, 0.0 }
 0xdf0   :  { %1560 = vadd.xlane.f32.xlu0 %v1559_v22  ;;  %v1556_v23 = vsel %vm23_vm0, %v2693_v21, 0.0 }
 0xdf1   :  { %1557 = vadd.xlane.f32.xlu1 %v1556_v23 }
 0xe7d   :  { %v1561_v24 = vpop.xlane.xlu0 %1560 }
 0xe7e   :  { %v1563_v25 = vmul.f32 0.03125, %v1561_v24  ;;  %v1558_v26 = vpop.xlane.xlu1 %1557 }
 0xe7f   :  { %v1562_v27 = vmul.f32 0.03125, %v1558_v26 }
 0xe80   :  { %v1565_v28 = vsub.f32 %v2690_v20, %v1563_v25 }
 0xe81   :  { %v1564_v7 = vsub.f32 %v2693_v21, %v1562_v27 }
 0xe82   :  { %v1567_v29 = vmul.f32 %v1565_v28, %v1565_v28 }
 0xe83   :  { %v1566_v30 = vmul.f32 %v1564_v7, %v1564_v7 }
 0xe84   :  { %v1571_v8 = vsel %vm23_vm0, %v1567_v29, 0.0 }
 0xe85   :  { %1572 = vadd.xlane.f32.xlu0 %v1571_v8  ;;  %v1568_v31 = vsel %vm23_vm0, %v1566_v30, 0.0 }
 0xe86   :  { %1569 = vadd.xlane.f32.xlu1 %v1568_v31 }
 0xf12   :  { %v1573_v38 = vpop.xlane.xlu0 %1572 }
 0xf13   :  { %v1575_v39 = vmul.f32 0.03125, %v1573_v38  ;;  %v1570_v40 = vpop.xlane.xlu1 %1569 }
 0xf14   :  { %v1574_v41 = vmul.f32 0.03125, %v1570_v40 }
 0xf15   :  { %v1577_v42 = vadd.f32 1e-05, %v1575_v39 }
 0xf16   :  { %v1576_v43 = vadd.f32 1e-05, %v1574_v41 }
 0xf17   :  { %2378 = vrsqrt.f32 %v1577_v42 }
 0xf18   :  { %2380 = vrsqrt.f32 %v1576_v43 }
 0xf21   :  { %v2379_v44 = vpop.eup %2378 }
 0xf22   :  { %v2381_v46 = vpop.eup %2380  ;;  %v1581_v47 = vmul.f32 %v2379_v44, %v1565_v28 }
 0xf23   :  { %v1580_v50 = vmul.f32 %v2381_v46, %v1564_v7 }
 0xf24   :  { %v1588_v51 = vmul.f32 %v1978_v45, %v1581_v47 }
 0xf25   :  { %v1587_v52 = vmul.f32 %v1978_v45, %v1580_v50 }
 0xf26   :  { %v1595_v53 = vadd.f32 %v1979_v49, %v1588_v51 }
 0xf27   :  { %v1594_v54 = vadd.f32 %v1979_v49, %v1587_v52 }
 0xf28   :  { %2382 = vtanh.f32 %v1595_v53 }
 0xf29   :  { %2384 = vtanh.f32 %v1594_v54 }
 0xf32   :  { %v2721_v55 = vpop.eup %2382 }
 0xf33   :  { %v2723_v56 = vpop.eup %2384  ;;  %vm1599_vm3 = vcmp.ge.f32.partialorder %v2721_v55, -1.0  ;;  %vm1601_vm4 = vcmp.lt.f32.partialorder %v2721_v55, -0.71428573  ;;  %v2728_v57 = vmul.f32 -21.4375, %v2721_v55  ;;  %vm1609_vm12 = vcmp.ge.f32.partialorder %v2721_v55, -0.71428573 }
 0xf34   :  { %vm1598_vm5 = vcmp.ge.f32.partialorder %v2723_v56, -1.0  ;;  %vm1600_vm6 = vcmp.lt.f32.partialorder %v2723_v56, -0.71428573  ;;  %v2733_v58 = vmul.f32 -21.4375, %v2723_v56  ;;  %vm1608_vm7 = vcmp.ge.f32.partialorder %v2723_v56, -0.71428573  ;;  %vm1603_vm9 = vmand %vm1599_vm3, %vm1601_vm4 }
 0xf35   :  { %vm1610_vm8 = vcmp.lt.f32.partialorder %v2723_v56, -0.42857143  ;;  %v1667_v59 = vadd.f32 -39.8125, %v2728_v57  ;;  %vm1602_vm10 = vmand %vm1598_vm5, %vm1600_vm6  ;;  %v2742_v2 = vsel %vm1603_vm9, 1.0, %v2421_v63  ;;  %vm1611_vm13 = vcmp.lt.f32.partialorder %v2721_v55, -0.42857143 }
 0xf36   :  { %v1666_v60 = vadd.f32 -39.8125, %v2733_v58  ;;  %vm1612_vm11 = vmand %vm1608_vm7, %vm1610_vm8  ;;  %v1980_v5 = vsel %vm1602_vm10, 1.0, %v2421_v63  ;;  %vm1618_vm14 = vcmp.ge.f32.partialorder %v2723_v56, -0.42857143  ;;  %vm1619_vm15 = vcmp.ge.f32.partialorder %v2721_v55, -0.42857143 }
 0xf37   :  { %v1669_v61 = vmul.f32 %v2721_v55, %v1667_v59  ;;  %v2749_v3 = vsel %vm1612_vm11, 1.0, %v2421_v63  ;;  %vm1620_vm1 = vcmp.lt.f32.partialorder %v2723_v56, -0.14285715  ;;  %vm1621_vm2 = vcmp.lt.f32.partialorder %v2721_v55, -0.14285715  ;;  %vm1613_vm7 = vmand %vm1609_vm12, %vm1611_vm13 }
 0xf38   :  { %v1668_v62 = vmul.f32 %v2723_v56, %v1666_v60  ;;  %v1648_v10 = vmul.f32 7.1458335, %v2723_v56  ;;  %v1649_v48 = vmul.f32 7.1458335, %v2721_v55  ;;  %vm1628_vm3 = vcmp.ge.f32.partialorder %v2723_v56, -0.14285715  ;;  %vm1622_vm8 = vmand %vm1618_vm14, %vm1620_vm1 }
 0xf39   :  { %v1671_v4 = vadd.f32 -22.3125, %v1669_v61  ;;  %vm1629_vm4 = vcmp.ge.f32.partialorder %v2721_v55, -0.14285715  ;;  %v2761_v12 = vmul.f32 21.4375, %v2723_v56  ;;  %v2764_v13 = vmul.f32 21.4375, %v2721_v55  ;;  %vm2797_vm9 = vmand %vm1619_vm15, %vm1621_vm2 }
 0xf3a   :  { %v1670_v6 = vadd.f32 -22.3125, %v1668_v62  ;;  %vm1630_vm5 = vcmp.lt.f32.partialorder %v2723_v56, 0.14285715  ;;  %vm1631_vm6 = vcmp.lt.f32.partialorder %v2721_v55, 0.14285715  ;;  %v1650_v14 = vadd.f32 21.4375, %v1648_v10 }
 0xf3b   :  { %v1673_v9 = vmul.f32 %v2721_v55, %v1671_v4  ;;  %v1651_v15 = vadd.f32 21.4375, %v1649_v48  ;;  %v1682_v16 = vadd.f32 15.3125, %v2761_v12  ;;  %v1683_v0 = vadd.f32 15.3125, %v2764_v13  ;;  %vm1632_vm10 = vmand %vm1628_vm3, %vm1630_vm5 }
 0xf3c   :  { %v1672_v11 = vmul.f32 %v2723_v56, %v1670_v6  ;;  %v2771_v17 = vmul.f32 -7.1458335, %v2723_v56  ;;  %v1652_v18 = vmul.f32 %v2723_v56, %v1650_v14  ;;  %v1697_v23 = vmul.f32 -7.1458335, %v2721_v55  ;;  %vm1633_vm11 = vmand %vm1629_vm4, %vm1631_vm6 }
 0xf3d   :  { %v1675_v1 = vadd.f32 -3.2708333, %v1673_v9  ;;  %v1653_v19 = vmul.f32 %v2721_v55, %v1651_v15  ;;  %v1684_v24 = vmul.f32 %v2723_v56, %v1682_v16  ;;  %v1685_v25 = vmul.f32 %v2721_v55, %v1683_v0 }
 0xf3e   :  { %v1674_v22 = vadd.f32 -3.2708333, %v1672_v11  ;;  %v1698_v26 = vadd.f32 3.0625, %v2771_v17  ;;  %v1721_v27 = vadd.f32 15.3125, %v1648_v10  ;;  %v1654_v28 = vadd.f32 21.4375, %v1652_v18 }
 0xf3f   :  { %v1655_v7 = vadd.f32 21.4375, %v1653_v19  ;;  %v1699_v29 = vadd.f32 3.0625, %v1697_v23  ;;  %v1722_v30 = vadd.f32 15.3125, %v1649_v48  ;;  %v1686_v8 = vadd.f32 1.3125, %v1684_v24 }
 0xf40   :  { %v1687_v31 = vadd.f32 1.3125, %v1685_v25  ;;  %v1700_v32 = vmul.f32 %v2723_v56, %v1698_v26  ;;  %v1723_v33 = vmul.f32 %v2723_v56, %v1721_v27  ;;  %v1656_v34 = vmul.f32 %v2723_v56, %v1654_v28 }
 0xf41   :  { %v1657_v35 = vmul.f32 %v2721_v55, %v1655_v7  ;;  %v1701_v36 = vmul.f32 %v2721_v55, %v1699_v29  ;;  %v1724_v37 = vmul.f32 %v2721_v55, %v1722_v30  ;;  %v1688_v39 = vmul.f32 %v2723_v56, %v1686_v8 }
 0xf42   :  { %v1689_v40 = vmul.f32 %v2721_v55, %v1687_v31  ;;  %v1702_v41 = vadd.f32 -0.4375, %v1700_v32  ;;  %v1725_v42 = vadd.f32 10.9375, %v1723_v33  ;;  %v1983_v43 = vsel %vm1613_vm7, 1.0, %v2421_v63 }
 0xf43   :  { %v1658_v44 = vadd.f32 7.1458335, %v1656_v34  ;;  %v1659_v45 = vadd.f32 7.1458335, %v1657_v35  ;;  %v1726_v46 = vadd.f32 10.9375, %v1724_v37  ;;  %v1984_v47 = vsel %vm1622_vm8, 1.0, %v2421_v63 }
 0xf44   :  { %v1676_v49 = vmul.f32 %v2749_v3, %v1674_v22  ;;  %v1690_v50 = vadd.f32 0.104166664, %v1688_v39  ;;  %v1703_v51 = vadd.f32 -0.4375, %v1701_v36  ;;  %v1691_v53 = vadd.f32 0.104166664, %v1689_v40 }
 0xf45   :  { %v1660_v52 = vmul.f32 %v1980_v5, %v1658_v44  ;;  %v1704_v54 = vmul.f32 %v2723_v56, %v1702_v41  ;;  %v1727_v59 = vmul.f32 %v2723_v56, %v1725_v42  ;;  %v1985_v60 = vsel %vm2797_vm9, 1.0, %v2421_v63 }
 0xf46   :  { %v1986_v61 = vsel %vm1632_vm10, 1.0, %v2421_v63  ;;  %vm1638_vm12 = vcmp.ge.f32.partialorder %v2723_v56, 0.14285715  ;;  %vm1640_vm13 = vcmp.lt.f32.partialorder %v2723_v56, 0.42857143  ;;  %v1987_v62 = vsel %vm1633_vm11, 1.0, %v2421_v63 }
 0xf47   :  { %vm1639_vm14 = vcmp.ge.f32.partialorder %v2721_v55, 0.14285715  ;;  %vm1641_vm15 = vcmp.lt.f32.partialorder %v2721_v55, 0.42857143  ;;  %v1661_v4 = vmul.f32 %v2742_v2, %v1659_v45  ;;  %v1677_v5 = vmul.f32 %v1983_v43, %v1675_v1  ;;  %vm2848_vm1 = vmand %vm1638_vm12, %vm1640_vm13 }
 0xf48   :  { %v1728_v6 = vmul.f32 %v2721_v55, %v1726_v46  ;;  %v1692_v9 = vmul.f32 %v1984_v47, %v1690_v50  ;;  %v1705_v10 = vmul.f32 %v2721_v55, %v1703_v51  ;;  %v1735_v48 = vadd.f32 -21.4375, %v2733_v58  ;;  %vm1643_vm2 = vmand %vm1639_vm14, %vm1641_vm15 }
 0xf49   :  { %v1736_v11 = vadd.f32 -21.4375, %v2728_v57  ;;  %v1678_v14 = vadd.f32 %v1676_v49, %v1660_v52  ;;  %v1693_v15 = vmul.f32 %v1985_v60, %v1691_v53  ;;  %v1706_v16 = vadd.f32 0.020833334, %v1704_v54 }
 0xf4a   :  { %v1729_v0 = vadd.f32 2.6041667, %v1727_v59  ;;  %v1737_v18 = vmul.f32 %v2723_v56, %v1735_v48  ;;  %v1749_v2 = vadd.f32 -3.0625, %v2761_v12  ;;  %v1750_v1 = vadd.f32 -3.0625, %v2764_v13 }
 0xf4b   :  { %v1738_v19 = vmul.f32 %v2721_v55, %v1736_v11  ;;  %v1679_v22 = vadd.f32 %v1677_v5, %v1661_v4  ;;  %v1730_v24 = vadd.f32 2.6041667, %v1728_v6  ;;  %v1763_v25 = vadd.f32 9.1875, %v2771_v17 }
 0xf4c   :  { %v1764_v26 = vadd.f32 9.1875, %v1697_v23  ;;  %v1739_v58 = vadd.f32 -4.8125, %v1737_v18  ;;  %v1751_v57 = vmul.f32 %v2723_v56, %v1749_v2  ;;  %v1752_v28 = vmul.f32 %v2721_v55, %v1750_v1 }
 0xf4d   :  { %v1740_v27 = vadd.f32 -4.8125, %v1738_v19  ;;  %v1707_v7 = vadd.f32 0.020833334, %v1705_v10  ;;  %v1731_v29 = vmul.f32 %v2749_v3, %v1729_v0  ;;  %v1765_v30 = vmul.f32 %v2723_v56, %v1763_v25 }
 0xf4e   :  { %v1766_v12 = vmul.f32 %v2721_v55, %v1764_v26  ;;  %v1741_v13 = vmul.f32 %v2723_v56, %v1739_v58  ;;  %v1753_v31 = vadd.f32 -2.1875, %v1751_v57  ;;  %v1754_v17 = vadd.f32 -2.1875, %v1752_v28 }
 0xf4f   :  { %v1742_v8 = vmul.f32 %v2721_v55, %v1740_v27  ;;  %v1694_v23 = vadd.f32 %v1692_v9, %v1678_v14  ;;  %v1732_v32 = vmul.f32 %v1983_v43, %v1730_v24  ;;  %v1767_v33 = vadd.f32 -3.9375, %v1765_v30 }
 0xf50   :  { %v1768_v34 = vadd.f32 -3.9375, %v1766_v12  ;;  %v1743_v35 = vadd.f32 0.35416666, %v1741_v13  ;;  %v1755_v37 = vmul.f32 %v2723_v56, %v1753_v31  ;;  %v1756_v3 = vmul.f32 %v2721_v55, %v1754_v17 }
 0xf51   :  { %v1744_v36 = vadd.f32 0.35416666, %v1742_v8  ;;  %v1695_v39 = vadd.f32 %v1693_v15, %v1679_v22  ;;  %v1708_v40 = vmul.f32 %v1986_v61, %v1706_v16  ;;  %v1769_v41 = vmul.f32 %v2723_v56, %v1767_v33 }
 0xf52   :  { %v1770_v42 = vmul.f32 %v2721_v55, %v1768_v34  ;;  %v1745_v43 = vmul.f32 %v1984_v47, %v1743_v35  ;;  %v1757_v45 = vadd.f32 0.47916666, %v1755_v37  ;;  %v1758_v46 = vadd.f32 0.47916666, %v1756_v3  ;;  %v1990_v47 = vld [vmem:[%s2898_s2 + $0xcd] ss:$0 sm:$0xff] }
 0xf53   :  { %v1746_v44 = vmul.f32 %v1985_v60, %v1744_v36  ;;  %v1709_v49 = vmul.f32 %v1987_v62, %v1707_v7  ;;  %v1710_v50 = vadd.f32 %v1708_v40, %v1694_v23  ;;  %v1771_v51 = vadd.f32 0.5625, %v1769_v41  ;;  %v1995_v36 = vld [vmem:[%s2898_s2 + $0xcc] ss:$0 sm:$0xff] }
 0xf54   :  { %v1772_v52 = vadd.f32 0.5625, %v1770_v42  ;;  %v1747_v53 = vadd.f32 %v1745_v43, %v1731_v29  ;;  %v1759_v59 = vmul.f32 %v1986_v61, %v1757_v45  ;;  %v1760_v4 = vmul.f32 %v1987_v62, %v1758_v46  ;;  %v1991_v61 = vld [vmem:[%s2898_s2 + $0xce] ss:$0 sm:$0xff] }
 0xf55   :  { %v1748_v54 = vadd.f32 %v1746_v44, %v1732_v32  ;;  %v1988_v56 = vsel %vm2848_vm1, 1.0, %v2421_v63  ;;  %v1989_v5 = vsel %vm1643_vm2, 1.0, %v2421_v63  ;;  %v1711_v55 = vadd.f32 %v1709_v49, %v1695_v39  ;;  %v1994_v32 = vld [vmem:[%s2898_s2 + $0xcb] ss:$0 sm:$0xff] }
 0xf56   :  { %v1761_v60 = vadd.f32 %v1759_v59, %v1747_v53  ;;  %v1773_v9 = vmul.f32 %v1988_v56, %v1771_v51  ;;  %v1774_v10 = vmul.f32 %v1989_v5, %v1772_v52  ;;  %v1717_v62 = vmul.f32 %v1990_v47, %v1710_v50 }
 0xf57   :  { %v1762_v6 = vadd.f32 %v1760_v4, %v1748_v54  ;;  %v1718_v14 = vmul.f32 %v1990_v47, %v1711_v55 }
 0xf58   :  { %v1775_v48 = vadd.f32 %v1773_v9, %v1761_v60 }
 0xf59   :  { %v1776_v11 = vadd.f32 %v1774_v10, %v1762_v6 }
 0xf5a   :  { %v1782_v15 = vmul.f32 %v1991_v61, %v1775_v48 }
 0xf5b   :  { %v1783_v16 = vmul.f32 %v1991_v61, %v1776_v11 }
 0xf5c   :  { %v1784_v63 = vadd.f32 %v1782_v15, %v1717_v62 }
 0xf5d   :  { %v1785_v0 = vadd.f32 %v1783_v16, %v1718_v14 }
 0xf5e   :  { %2193 = vmatprep.mubr.msk.f32.mxu0 %vm23_vm0, %v1784_v63 }
 0xf5f   :  { %2194 = vmatmul.mubr.msk.f32.vlgmr.msra.gmra.mrb[10].mxu0 %vm23_vm0, %v1785_v0 }
0x1032   :  { %v2195_v18 = vpop.f32.mrb[10].mxu0 }
0x1033   :  { %v1872_v19 = vadd.f32 %v2195_v18, %v2690_v20  ;;  %v1862_v2 = vpop.f32.mrb[11].mxu0 }
0x1034   :  { %v1871_v1 = vadd.f32 %v1862_v2, %v2693_v21 }
0x1035   :  { %v1876_v22 = vsel %vm23_vm0, %v1872_v19, 0.0 }
0x1036   :  { %1877 = vadd.xlane.f32.xlu0 %v1876_v22  ;;  %v1873_v24 = vsel %vm23_vm0, %v1871_v1, 0.0 }
0x1037   :  { %1874 = vadd.xlane.f32.xlu1 %v1873_v24 }
0x10c3   :  { %v1878_v25 = vpop.xlane.xlu0 %1877 }
0x10c4   :  { %v1880_v26 = vmul.f32 0.03125, %v1878_v25  ;;  %v1875_v58 = vpop.xlane.xlu1 %1874 }
0x10c5   :  { %v1879_v27 = vmul.f32 0.03125, %v1875_v58 }
0x10c6   :  { %v1882_v57 = vsub.f32 %v1872_v19, %v1880_v26 }
0x10c7   :  { %v1881_v28 = vsub.f32 %v1871_v1, %v1879_v27 }
0x10c8   :  { %v1884_v7 = vmul.f32 %v1882_v57, %v1882_v57 }
0x10c9   :  { %v1883_v29 = vmul.f32 %v1881_v28, %v1881_v28 }
0x10ca   :  { %v1888_v30 = vsel %vm23_vm0, %v1884_v7, 0.0 }
0x10cb   :  { %1889 = vadd.xlane.f32.xlu0 %v1888_v30  ;;  %v1885_v20 = vsel %vm23_vm0, %v1883_v29, 0.0 }
0x10cc   :  { %1886 = vadd.xlane.f32.xlu1 %v1885_v20 }
0x1158   :  { %v1890_v21 = vpop.xlane.xlu0 %1889 }
0x1159   :  { %v1892_v12 = vmul.f32 0.03125, %v1890_v21  ;;  %v1887_v13 = vpop.xlane.xlu1 %1886 }
0x115a   :  { %v1891_v8 = vmul.f32 0.03125, %v1887_v13 }
0x115b   :  { %v1894_v31 = vadd.f32 1e-05, %v1892_v12 }
0x115c   :  { %v1893_v17 = vadd.f32 1e-05, %v1891_v8 }
0x115d   :  { %2386 = vrsqrt.f32 %v1894_v31 }
0x115e   :  { %2388 = vrsqrt.f32 %v1893_v17 }
0x1167   :  { %v2387_v23 = vpop.eup %2386 }
0x1168   :  { %v2389_v33 = vpop.eup %2388  ;;  %v1898_v34 = vmul.f32 %v2387_v23, %v1882_v57 }
0x1169   :  { %v1897_v35 = vmul.f32 %v2389_v33, %v1881_v28 }
0x116a   :  { %v1905_v37 = vmul.f32 %v1994_v32, %v1898_v34 }
0x116b   :  { %v1904_v3 = vmul.f32 %v1994_v32, %v1897_v35 }
0x116c   :  { %v1912_v38 = vadd.f32 %v1995_v36, %v1905_v37 }
0x116d   :  { %v1911_v39 = vadd.f32 %v1995_v36, %v1904_v3 }
0x116e   :  { %1914 = vst.msk [vmem:[#allocation2 + $0x8] sm:$0xff] %vm23_vm0, %v1912_v38 }
0x116f   :  { %1913 = vst.msk [vmem:[#allocation2] sm:$0xff] %vm23_vm0, %v1911_v39 }
0x1170   :  { %2401 = shalt.err (!%p2398_p4)
}
0x1171   :  { %s2402_s6 = scalar_lea.hbm %s2899_s3, 256 }
0x1172   :  { %p2403_p5 = scmp.ne.s32.totalorder %s2899_s3, %s2402_s6  ;;  %p2406_p6 = scmp.lt.u32.totalorder %s2402_s6, %s2899_s3 }
0x1174   :  { %p2408_p7 = pnand %p2406_p6, %p2403_p5 }
0x1176   :  { %2411 = shalt.err (!%p2408_p7)
}
0x1177   :  { %s2423_s13 = smov 128   ;;  %s2424_s14 = smov 8  }
0x1178   :  { %1926 = dma.vmem_to_hbm [thread:$0]  %s1921_s11, 256, %s2899_s3, [#allocation3], %s2423_s13, %s2423_s13, %s2424_s14  }
0x1179   :  { %2412 = dma.done.wait [#allocation3], 256  }
0x117a   :  { %2413 = vsyncadd [#allocation3], 4294967040 }
0x117b   :  { %1930 = vsyncpa [#allocation3], 1 }

</bundles_post_ra>
